<compile_context>
chip_gen: v7x
topology: tpu7x:2x2x1
jax: 0.10.0
libtpu: 0.0.40
codegen_flags: <defaults>
</compile_context>

<pallas_src>
import jax
import jax.numpy as jnp
from jax import lax
from jax.experimental import pallas as pl
from jax.experimental.pallas import tpu as pltpu

MARGIN = 8   # zero guard rows above/below each padded stage buffer (needs >= 1)
K1PAD = 16   # conv1 im2col K (9 taps) padded to 16 lanes


def _make_cnn_kernel(H, W):
    """Fused forward kernel (one batch sample per grid step) + scratch list."""
    assert H % 8 == 0 and W % 8 == 0, "three 2x2 pools need H, W divisible by 8"
    H1, W1 = H, W
    H2, W2 = H1 // 2, W1 // 2
    H3, W3 = H2 // 2, W2 // 2
    Ho, Wo = H3 // 2, W3 // 2
    Hp2, Wp2 = H2 + 2, W2 + 2            # padded spatial dims of conv2 input
    Hp3, Wp3 = H3 + 2, W3 + 2            # padded spatial dims of conv3 input
    R2 = H2 * Wp2                        # conv2 rows computed (valid h, padded w)
    R3 = H3 * Wp3                        # conv3 rows computed

    def pool4(acc_ref, base0, base1, n_wo):
        # 2x2/2 max pool of one output row: four stride-2 sublane reads
        # (one per window corner), three maxes -> (n_wo, C) in f32.
        if n_wo > 1:
            a = acc_ref[pl.ds(base0, n_wo, stride=2), :]
            b = acc_ref[pl.ds(base0 + 1, n_wo, stride=2), :]
            c = acc_ref[pl.ds(base1, n_wo, stride=2), :]
            d = acc_ref[pl.ds(base1 + 1, n_wo, stride=2), :]
        else:
            a = acc_ref[base0:base0 + 1, :]
            b = acc_ref[base0 + 1:base0 + 2, :]
            c = acc_ref[base1:base1 + 1, :]
            d = acc_ref[base1 + 1:base1 + 2, :]
        return jnp.maximum(jnp.maximum(a, b), jnp.maximum(c, d))

    def im2col_lhs(p_ref, rows, Wp):
        # Lane-concat of the 9 shifted tap slices -> (rows, 9*Cin) lhs, then a
        # single bf16 pack feeding one MXU matmul (instead of 9 tiny matmuls
        # with 9 separate per-tap casts + 8 f32 adds).
        taps = []
        for dh in range(3):
            for dw in range(3):
                off = (dh - 1) * Wp + (dw - 1)
                start = MARGIN + Wp + off
                taps.append(p_ref[start:start + rows, :])
        return jnp.concatenate(taps, axis=1).astype(jnp.bfloat16)

    def kernel(x_ref, w1_ref, b1_ref, w2_ref, b2_ref, w3_ref, b3_ref,
               fw1_ref, fb1_ref, fw2_ref, fb2_ref, o_ref,
               acc1_ref, p2_ref, acc2_ref, p3_ref, acc3_ref):
        # Zero the padded stage buffers.  Only the pad ring is actually
        # consumed as zeros (the pool scatter overwrites the interior), but
        # the slabs are tiny so one bulk store beats many ring-only stores.
        p2_ref[...] = jnp.zeros_like(p2_ref)
        p3_ref[...] = jnp.zeros_like(p3_ref)

        # ----- stage 1: conv1 (1->32) on wrapper-built patches + bias + ReLU -----
        acc1_ref[...] = jnp.maximum(
            jnp.dot(x_ref[0], w1_ref[...], preferred_element_type=jnp.float32)
            + b1_ref[...], 0.0)
        # pool1: one contiguous (W2, 32) store per output row into padded p2
        for ho in range(H2):
            pooled = pool4(acc1_ref, 2 * ho * W1, (2 * ho + 1) * W1, W2)
            dst = MARGIN + (ho + 1) * Wp2 + 1
            p2_ref[dst:dst + W2, :] = pooled

        # ----- stage 2: conv2 (32->64) as ONE (R2, 288) @ (288, 64) matmul -----
        acc2_ref[...] = jnp.maximum(
            jnp.dot(im2col_lhs(p2_ref, R2, Wp2), w2_ref[...],
                    preferred_element_type=jnp.float32) + b2_ref[...], 0.0)
        for ho in range(H3):
            pooled = pool4(acc2_ref, 2 * ho * Wp2 + 1, (2 * ho + 1) * Wp2 + 1, W3)
            dst = MARGIN + (ho + 1) * Wp3 + 1
            p3_ref[dst:dst + W3, :] = pooled

        # ----- stage 3: conv3 (64->128) as ONE (R3, 576) @ (576, 128) matmul -----
        acc3_ref[...] = jnp.maximum(
            jnp.dot(im2col_lhs(p3_ref, R3, Wp3), w3_ref[...],
                    preferred_element_type=jnp.float32) + b3_ref[...], 0.0)

        # ----- pool3 fused into fc1: each pooled (1,128) row hits its 128-row
        # block of fc1_w (NHWC flatten order folded into the weight at init) -----
        h1 = fb1_ref[...]
        for ho in range(Ho):
            pooled = pool4(acc3_ref, 2 * ho * Wp3 + 1, (2 * ho + 1) * Wp3 + 1, Wo)
            for wo in range(Wo):
                blk = (ho * Wo + wo) * 128
                h1 = h1 + jnp.dot(pooled[wo:wo + 1, :].astype(jnp.bfloat16),
                                  fw1_ref[blk:blk + 128, :],
                                  preferred_element_type=jnp.float32)
        h1 = jnp.maximum(h1, 0.0)
        out = jnp.dot(h1, fw2_ref[...], preferred_element_type=jnp.float32) + fb2_ref[...]
        o_ref[...] = out.reshape(o_ref.shape)

    scratch = [
        pltpu.VMEM((H1 * W1, 32), jnp.float32),                   # conv1 out (+ReLU)
        pltpu.VMEM((2 * MARGIN + Hp2 * Wp2, 32), jnp.float32),    # padded conv2 input
        pltpu.VMEM((R2, 64), jnp.float32),                        # conv2 out (+ReLU)
        pltpu.VMEM((2 * MARGIN + Hp3 * Wp3, 64), jnp.float32),    # padded conv3 input
        pltpu.VMEM((R3, 128), jnp.float32),                       # conv3 out (+ReLU)
    ]
    return kernel, scratch


def _conv1_patches(x_nchw):
    """Wrapper-side im2col for conv1: (N,1,H,W) -> lane-dense (N, H*W, 16) f32."""
    N, C, H, W = x_nchw.shape
    x = x_nchw.reshape(N, H, W).astype(jnp.float32)
    xp = jnp.pad(x, ((0, 0), (1, 1), (1, 1)))
    taps = [xp[:, dh:dh + H, dw:dw + W] for dh in range(3) for dw in range(3)]
    cols = jnp.stack(taps, axis=-1).reshape(N, H * W, 9)
    return jnp.pad(cols, ((0, 0), (0, 0), (0, K1PAD - 9)))


def cnn_forward(x_nchw, params):
    N, C, H, W = x_nchw.shape
    assert C == 1
    Ho, Wo = H // 8, W // 8
    assert params["fc1_w"].shape[0] == Ho * Wo * 128

    kernel, scratch = _make_cnn_kernel(H, W)

    x_cols = _conv1_patches(x_nchw)                                  # (N, H*W, 16)
    w1 = jnp.pad(params["conv1_w"].astype(jnp.float32), ((0, K1PAD - 9), (0, 0)))

    # f32 master weights; the bf16 cast happens here, once, at the MXU boundary.
    inputs = (
        x_cols,
        w1, params["conv1_b"].reshape(1, -1).astype(jnp.float32),
        params["conv2_w"].astype(jnp.bfloat16), params["conv2_b"].reshape(1, -1),
        params["conv3_w"].astype(jnp.bfloat16), params["conv3_b"].reshape(1, -1),
        params["fc1_w"].astype(jnp.bfloat16), params["fc1_b"].reshape(1, -1),
        params["fc2_w"].astype(jnp.float32), params["fc2_b"].reshape(1, -1),
    )

    in_specs = [pl.BlockSpec((1, H * W, K1PAD), lambda n: (n, 0, 0))]
    in_specs += [pl.BlockSpec(a.shape, lambda n: (0, 0)) for a in inputs[1:]]

    out = pl.pallas_call(
        kernel,
        out_shape=jax.ShapeDtypeStruct((N, 1, 2), jnp.float32),
        grid=(N,),
        in_specs=in_specs,
        out_specs=pl.BlockSpec((1, 1, 2), lambda n: (n, 0, 0)),
        scratch_shapes=scratch,
        compiler_params=pltpu.CompilerParams(
            dimension_semantics=("parallel",)),
    )(*inputs)
    return out.reshape(N, 2)


def init_params(key):
    ks = jax.random.split(key, 10)

    def nrm(k, shape, scale):
        return scale * jax.random.normal(k, shape, dtype=jnp.float32)

    return {
        # Conv weights stored HWIO-flattened: row index = (kh*3 + kw)*Cin + cin.
        "conv1_w": nrm(ks[0], (9 * 1, 32), 0.30),
        "conv1_b": nrm(ks[1], (32,), 0.10),
        "conv2_w": nrm(ks[2], (9 * 32, 64), 0.12),
        "conv2_b": nrm(ks[3], (64,), 0.10),
        "conv3_w": nrm(ks[4], (9 * 64, 128), 0.08),
        "conv3_b": nrm(ks[5], (128,), 0.10),
        # fc1 rows in NHWC-flatten order (h, w, c): the PyTorch NCHW view(N,-1)
        # permutation is folded into the weight row order at init (free).
        "fc1_w": nrm(ks[6], (128 * 2 * 1, 128), 0.10),
        "fc1_b": nrm(ks[7], (128,), 0.10),
        "fc2_w": nrm(ks[8], (128, 2), 0.15),
        "fc2_b": nrm(ks[9], (2,), 0.10),
    }


# ----------------------- pure-JAX reference (sanity check) -----------------------

def cnn_forward_ref(x_nchw, params):
    x = jnp.transpose(x_nchw, (0, 2, 3, 1)).astype(jnp.float32)

    def conv(x, w_flat, b):
        cin, cout = x.shape[-1], w_flat.shape[-1]
        w = w_flat.astype(jnp.float32).reshape(3, 3, cin, cout)   # HWIO
        y = lax.conv_general_dilated(x, w, (1, 1), "SAME",
                                     dimension_numbers=("NHWC", "HWIO", "NHWC"))
        return jnp.maximum(y + b.astype(jnp.float32), 0.0)

    def pool(x):
        return lax.reduce_window(x, -jnp.inf, lax.max,
                                 (1, 2, 2, 1), (1, 2, 2, 1), "VALID")

    x = pool(conv(x, params["conv1_w"], params["conv1_b"]))
    x = pool(conv(x, params["conv2_w"], params["conv2_b"]))
    x = pool(conv(x, params["conv3_w"], params["conv3_b"]))
    N = x.shape[0]
    x = x.reshape(N, -1)   # NHWC flatten -- matches the fc1_w row order used above
    x = jnp.maximum(x @ params["fc1_w"] + params["fc1_b"], 0.0)
    return x @ params["fc2_w"] + params["fc2_b"]


if __name__ == "__main__":
    key = jax.random.PRNGKey(0)
    k_x, k_p = jax.random.split(key)
    # fc1 expects 128*2*1 features => input spatial 16x8 (three 2x2 pools), Cin=1.
    x = jax.random.normal(k_x, (2, 1, 16, 8), dtype=jnp.float32)  # NCHW
    params = init_params(k_p)

    out = jax.jit(cnn_forward)(x, params)
    out = jax.block_until_ready(out)

    ref = cnn_forward_ref(x, params)
    assert out.shape == (2, 2)
    # bf16 MXU operands (f32 accumulation) vs. f32 reference => loosened tolerance.
    assert jnp.allclose(out, ref, atol=5e-2, rtol=5e-2), (out, ref)

    print("KERNEL_OK")
</pallas_src>

<mosaic_0001>
module attributes {stable_mosaic.version = 11 : i64} {
  func.func @kernel(%arg0: i32, %arg1: memref<1x128x16xf32, #tpu.memory_space<vmem>>, %arg2: memref<16x32xf32, #tpu.memory_space<vmem>>, %arg3: memref<1x32xf32, #tpu.memory_space<vmem>>, %arg4: memref<288x64xbf16, #tpu.memory_space<vmem>>, %arg5: memref<1x64xf32, #tpu.memory_space<vmem>>, %arg6: memref<576x128xbf16, #tpu.memory_space<vmem>>, %arg7: memref<1x128xf32, #tpu.memory_space<vmem>>, %arg8: memref<256x128xbf16, #tpu.memory_space<vmem>>, %arg9: memref<1x128xf32, #tpu.memory_space<vmem>>, %arg10: memref<128x2xf32, #tpu.memory_space<vmem>>, %arg11: memref<1x2xf32, #tpu.memory_space<vmem>>, %arg12: memref<1x1x2xf32, #tpu.memory_space<vmem>>, %arg13: memref<128x32xf32, #tpu.memory_space<vmem>>, %arg14: memref<76x32xf32, #tpu.memory_space<vmem>>, %arg15: memref<48x64xf32, #tpu.memory_space<vmem>>, %arg16: memref<40x64xf32, #tpu.memory_space<vmem>>, %arg17: memref<16x128xf32, #tpu.memory_space<vmem>>) attributes {dimension_semantics = [#tpu.dimension_semantics<parallel>], iteration_bounds = array<i64: 2>, scalar_prefetch = 0 : i64, scratch_operands = 5 : i64, tpu.core_type = #tpu.core_type<tc>, window_params = [{transform_indices = @transform_0, window_bounds = array<i64: 1, 128, 16>}, {pipeline_mode = #tpu.pipeline_mode<synchronous>, transform_indices = @transform_1, window_bounds = array<i64: 16, 32>}, {pipeline_mode = #tpu.pipeline_mode<synchronous>, transform_indices = @transform_2, window_bounds = array<i64: 1, 32>}, {pipeline_mode = #tpu.pipeline_mode<synchronous>, transform_indices = @transform_3, window_bounds = array<i64: 288, 64>}, {pipeline_mode = #tpu.pipeline_mode<synchronous>, transform_indices = @transform_4, window_bounds = array<i64: 1, 64>}, {pipeline_mode = #tpu.pipeline_mode<synchronous>, transform_indices = @transform_5, window_bounds = array<i64: 576, 128>}, {pipeline_mode = #tpu.pipeline_mode<synchronous>, transform_indices = @transform_6, window_bounds = array<i64: 1, 128>}, {pipeline_mode = #tpu.pipeline_mode<synchronous>, transform_indices = @transform_7, window_bounds = array<i64: 256, 128>}, {pipeline_mode = #tpu.pipeline_mode<synchronous>, transform_indices = @transform_8, window_bounds = array<i64: 1, 128>}, {pipeline_mode = #tpu.pipeline_mode<synchronous>, transform_indices = @transform_9, window_bounds = array<i64: 128, 2>}, {pipeline_mode = #tpu.pipeline_mode<synchronous>, transform_indices = @transform_10, window_bounds = array<i64: 1, 2>}, {transform_indices = @transform_11, window_bounds = array<i64: 1, 1, 2>}]} {
    %cst = arith.constant 0.000000e+00 : f32
    %0 = vector.broadcast %cst : f32 to vector<76x32xf32>
    %c0 = arith.constant 0 : index
    %c0_0 = arith.constant 0 : index
    %1 = vector.load %arg14[%c0, %c0_0] : memref<76x32xf32, #tpu.memory_space<vmem>>, vector<76x32xf32>
    tpu.vector_store %arg14[%c0, %c0_0], %0 {strides = array<i32>} : memref<76x32xf32, #tpu.memory_space<vmem>>, vector<76x32xf32>,
    %cst_1 = arith.constant 0.000000e+00 : f32
    %2 = vector.broadcast %cst_1 : f32 to vector<40x64xf32>
    %c0_2 = arith.constant 0 : index
    %c0_3 = arith.constant 0 : index
    %3 = vector.load %arg16[%c0_2, %c0_3] : memref<40x64xf32, #tpu.memory_space<vmem>>, vector<40x64xf32>
    tpu.vector_store %arg16[%c0_2, %c0_3], %2 {strides = array<i32>} : memref<40x64xf32, #tpu.memory_space<vmem>>, vector<40x64xf32>,
    %c0_4 = arith.constant 0 : index
    %c0_5 = arith.constant 0 : index
    %c0_6 = arith.constant 0 : index
    %4 = vector.load %arg1[%c0_4, %c0_5, %c0_6] : memref<1x128x16xf32, #tpu.memory_space<vmem>>, vector<1x128x16xf32>
    %5 = vector.shape_cast %4 : vector<1x128x16xf32> to vector<128x16xf32>
    %c0_7 = arith.constant 0 : index
    %c0_8 = arith.constant 0 : index
    %6 = vector.load %arg2[%c0_7, %c0_8] : memref<16x32xf32, #tpu.memory_space<vmem>>, vector<16x32xf32>
    %cst_9 = arith.constant dense<0.000000e+00> : vector<128x32xf32>
    %7 = tpu.matmul %5, %6, %cst_9 {dimension_numbers = #tpu.dot_dimension_numbers<[1], [0], [0], [1], [0, 0, 1, 1], [], []>} : vector<128x16xf32>, vector<16x32xf32>, vector<128x32xf32> -> vector<128x32xf32>
    %c0_10 = arith.constant 0 : index
    %c0_11 = arith.constant 0 : index
    %8 = vector.load %arg3[%c0_10, %c0_11] : memref<1x32xf32, #tpu.memory_space<vmem>>, vector<1x32xf32>
    %9 = vector.broadcast %8 : vector<1x32xf32> to vector<128x32xf32>
    %10 = arith.addf %7, %9 : vector<128x32xf32>
    %cst_12 = arith.constant 0.000000e+00 : f32
    %11 = vector.broadcast %cst_12 : f32 to vector<128x32xf32>
    %12 = arith.maximumf %10, %11 : vector<128x32xf32>
    %c0_13 = arith.constant 0 : index
    %c0_14 = arith.constant 0 : index
    %13 = vector.load %arg13[%c0_13, %c0_14] : memref<128x32xf32, #tpu.memory_space<vmem>>, vector<128x32xf32>
    tpu.vector_store %arg13[%c0_13, %c0_14], %12 {strides = array<i32>} : memref<128x32xf32, #tpu.memory_space<vmem>>, vector<128x32xf32>,
    %c0_15 = arith.constant 0 : index
    %c0_16 = arith.constant 0 : index
    %14 = tpu.strided_load %arg13[%c0_15, %c0_16] {strides = array<i32: 2, 1>} : memref<128x32xf32, #tpu.memory_space<vmem>>, vector<4x32xf32>
    %c1 = arith.constant 1 : index
    %c0_17 = arith.constant 0 : index
    %15 = tpu.strided_load %arg13[%c1, %c0_17] {strides = array<i32: 2, 1>} : memref<128x32xf32, #tpu.memory_space<vmem>>, vector<4x32xf32>
    %c8 = arith.constant 8 : index
    %c0_18 = arith.constant 0 : index
    %16 = tpu.strided_load %arg13[%c8, %c0_18] {strides = array<i32: 2, 1>} : memref<128x32xf32, #tpu.memory_space<vmem>>, vector<4x32xf32>
    %c9 = arith.constant 9 : index
    %c0_19 = arith.constant 0 : index
    %17 = tpu.strided_load %arg13[%c9, %c0_19] {strides = array<i32: 2, 1>} : memref<128x32xf32, #tpu.memory_space<vmem>>, vector<4x32xf32>
    %18 = arith.maximumf %14, %15 : vector<4x32xf32>
    %19 = arith.maximumf %16, %17 : vector<4x32xf32>
    %20 = arith.maximumf %18, %19 : vector<4x32xf32>
    %c15 = arith.constant 15 : index
    %c0_20 = arith.constant 0 : index
    %21 = vector.load %arg14[%c15, %c0_20] : memref<76x32xf32, #tpu.memory_space<vmem>>, vector<4x32xf32>
    tpu.vector_store %arg14[%c15, %c0_20], %20 {strides = array<i32>} : memref<76x32xf32, #tpu.memory_space<vmem>>, vector<4x32xf32>,
    %c16 = arith.constant 16 : index
    %c0_21 = arith.constant 0 : index
    %22 = tpu.strided_load %arg13[%c16, %c0_21] {strides = array<i32: 2, 1>} : memref<128x32xf32, #tpu.memory_space<vmem>>, vector<4x32xf32>
    %c17 = arith.constant 17 : index
    %c0_22 = arith.constant 0 : index
    %23 = tpu.strided_load %arg13[%c17, %c0_22] {strides = array<i32: 2, 1>} : memref<128x32xf32, #tpu.memory_space<vmem>>, vector<4x32xf32>
    %c24 = arith.constant 24 : index
    %c0_23 = arith.constant 0 : index
    %24 = tpu.strided_load %arg13[%c24, %c0_23] {strides = array<i32: 2, 1>} : memref<128x32xf32, #tpu.memory_space<vmem>>, vector<4x32xf32>
    %c25 = arith.constant 25 : index
    %c0_24 = arith.constant 0 : index
    %25 = tpu.strided_load %arg13[%c25, %c0_24] {strides = array<i32: 2, 1>} : memref<128x32xf32, #tpu.memory_space<vmem>>, vector<4x32xf32>
    %26 = arith.maximumf %22, %23 : vector<4x32xf32>
    %27 = arith.maximumf %24, %25 : vector<4x32xf32>
    %28 = arith.maximumf %26, %27 : vector<4x32xf32>
    %c21 = arith.constant 21 : index
    %c0_25 = arith.constant 0 : index
    %29 = vector.load %arg14[%c21, %c0_25] : memref<76x32xf32, #tpu.memory_space<vmem>>, vector<4x32xf32>
    tpu.vector_store %arg14[%c21, %c0_25], %28 {strides = array<i32>} : memref<76x32xf32, #tpu.memory_space<vmem>>, vector<4x32xf32>,
    %c32 = arith.constant 32 : index
    %c0_26 = arith.constant 0 : index
    %30 = tpu.strided_load %arg13[%c32, %c0_26] {strides = array<i32: 2, 1>} : memref<128x32xf32, #tpu.memory_space<vmem>>, vector<4x32xf32>
    %c33 = arith.constant 33 : index
    %c0_27 = arith.constant 0 : index
    %31 = tpu.strided_load %arg13[%c33, %c0_27] {strides = array<i32: 2, 1>} : memref<128x32xf32, #tpu.memory_space<vmem>>, vector<4x32xf32>
    %c40 = arith.constant 40 : index
    %c0_28 = arith.constant 0 : index
    %32 = tpu.strided_load %arg13[%c40, %c0_28] {strides = array<i32: 2, 1>} : memref<128x32xf32, #tpu.memory_space<vmem>>, vector<4x32xf32>
    %c41 = arith.constant 41 : index
    %c0_29 = arith.constant 0 : index
    %33 = tpu.strided_load %arg13[%c41, %c0_29] {strides = array<i32: 2, 1>} : memref<128x32xf32, #tpu.memory_space<vmem>>, vector<4x32xf32>
    %34 = arith.maximumf %30, %31 : vector<4x32xf32>
    %35 = arith.maximumf %32, %33 : vector<4x32xf32>
    %36 = arith.maximumf %34, %35 : vector<4x32xf32>
    %c27 = arith.constant 27 : index
    %c0_30 = arith.constant 0 : index
    %37 = vector.load %arg14[%c27, %c0_30] : memref<76x32xf32, #tpu.memory_space<vmem>>, vector<4x32xf32>
    tpu.vector_store %arg14[%c27, %c0_30], %36 {strides = array<i32>} : memref<76x32xf32, #tpu.memory_space<vmem>>, vector<4x32xf32>,
    %c48 = arith.constant 48 : index
    %c0_31 = arith.constant 0 : index
    %38 = tpu.strided_load %arg13[%c48, %c0_31] {strides = array<i32: 2, 1>} : memref<128x32xf32, #tpu.memory_space<vmem>>, vector<4x32xf32>
    %c49 = arith.constant 49 : index
    %c0_32 = arith.constant 0 : index
    %39 = tpu.strided_load %arg13[%c49, %c0_32] {strides = array<i32: 2, 1>} : memref<128x32xf32, #tpu.memory_space<vmem>>, vector<4x32xf32>
    %c56 = arith.constant 56 : index
    %c0_33 = arith.constant 0 : index
    %40 = tpu.strided_load %arg13[%c56, %c0_33] {strides = array<i32: 2, 1>} : memref<128x32xf32, #tpu.memory_space<vmem>>, vector<4x32xf32>
    %c57 = arith.constant 57 : index
    %c0_34 = arith.constant 0 : index
    %41 = tpu.strided_load %arg13[%c57, %c0_34] {strides = array<i32: 2, 1>} : memref<128x32xf32, #tpu.memory_space<vmem>>, vector<4x32xf32>
    %42 = arith.maximumf %38, %39 : vector<4x32xf32>
    %43 = arith.maximumf %40, %41 : vector<4x32xf32>
    %44 = arith.maximumf %42, %43 : vector<4x32xf32>
    %c33_35 = arith.constant 33 : index
    %c0_36 = arith.constant 0 : index
    %45 = vector.load %arg14[%c33_35, %c0_36] : memref<76x32xf32, #tpu.memory_space<vmem>>, vector<4x32xf32>
    tpu.vector_store %arg14[%c33_35, %c0_36], %44 {strides = array<i32>} : memref<76x32xf32, #tpu.memory_space<vmem>>, vector<4x32xf32>,
    %c64 = arith.constant 64 : index
    %c0_37 = arith.constant 0 : index
    %46 = tpu.strided_load %arg13[%c64, %c0_37] {strides = array<i32: 2, 1>} : memref<128x32xf32, #tpu.memory_space<vmem>>, vector<4x32xf32>
    %c65 = arith.constant 65 : index
    %c0_38 = arith.constant 0 : index
    %47 = tpu.strided_load %arg13[%c65, %c0_38] {strides = array<i32: 2, 1>} : memref<128x32xf32, #tpu.memory_space<vmem>>, vector<4x32xf32>
    %c72 = arith.constant 72 : index
    %c0_39 = arith.constant 0 : index
    %48 = tpu.strided_load %arg13[%c72, %c0_39] {strides = array<i32: 2, 1>} : memref<128x32xf32, #tpu.memory_space<vmem>>, vector<4x32xf32>
    %c73 = arith.constant 73 : index
    %c0_40 = arith.constant 0 : index
    %49 = tpu.strided_load %arg13[%c73, %c0_40] {strides = array<i32: 2, 1>} : memref<128x32xf32, #tpu.memory_space<vmem>>, vector<4x32xf32>
    %50 = arith.maximumf %46, %47 : vector<4x32xf32>
    %51 = arith.maximumf %48, %49 : vector<4x32xf32>
    %52 = arith.maximumf %50, %51 : vector<4x32xf32>
    %c39 = arith.constant 39 : index
    %c0_41 = arith.constant 0 : index
    %53 = vector.load %arg14[%c39, %c0_41] : memref<76x32xf32, #tpu.memory_space<vmem>>, vector<4x32xf32>
    tpu.vector_store %arg14[%c39, %c0_41], %52 {strides = array<i32>} : memref<76x32xf32, #tpu.memory_space<vmem>>, vector<4x32xf32>,
    %c80 = arith.constant 80 : index
    %c0_42 = arith.constant 0 : index
    %54 = tpu.strided_load %arg13[%c80, %c0_42] {strides = array<i32: 2, 1>} : memref<128x32xf32, #tpu.memory_space<vmem>>, vector<4x32xf32>
    %c81 = arith.constant 81 : index
    %c0_43 = arith.constant 0 : index
    %55 = tpu.strided_load %arg13[%c81, %c0_43] {strides = array<i32: 2, 1>} : memref<128x32xf32, #tpu.memory_space<vmem>>, vector<4x32xf32>
    %c88 = arith.constant 88 : index
    %c0_44 = arith.constant 0 : index
    %56 = tpu.strided_load %arg13[%c88, %c0_44] {strides = array<i32: 2, 1>} : memref<128x32xf32, #tpu.memory_space<vmem>>, vector<4x32xf32>
    %c89 = arith.constant 89 : index
    %c0_45 = arith.constant 0 : index
    %57 = tpu.strided_load %arg13[%c89, %c0_45] {strides = array<i32: 2, 1>} : memref<128x32xf32, #tpu.memory_space<vmem>>, vector<4x32xf32>
    %58 = arith.maximumf %54, %55 : vector<4x32xf32>
    %59 = arith.maximumf %56, %57 : vector<4x32xf32>
    %60 = arith.maximumf %58, %59 : vector<4x32xf32>
    %c45 = arith.constant 45 : index
    %c0_46 = arith.constant 0 : index
    %61 = vector.load %arg14[%c45, %c0_46] : memref<76x32xf32, #tpu.memory_space<vmem>>, vector<4x32xf32>
    tpu.vector_store %arg14[%c45, %c0_46], %60 {strides = array<i32>} : memref<76x32xf32, #tpu.memory_space<vmem>>, vector<4x32xf32>,
    %c96 = arith.constant 96 : index
    %c0_47 = arith.constant 0 : index
    %62 = tpu.strided_load %arg13[%c96, %c0_47] {strides = array<i32: 2, 1>} : memref<128x32xf32, #tpu.memory_space<vmem>>, vector<4x32xf32>
    %c97 = arith.constant 97 : index
    %c0_48 = arith.constant 0 : index
    %63 = tpu.strided_load %arg13[%c97, %c0_48] {strides = array<i32: 2, 1>} : memref<128x32xf32, #tpu.memory_space<vmem>>, vector<4x32xf32>
    %c104 = arith.constant 104 : index
    %c0_49 = arith.constant 0 : index
    %64 = tpu.strided_load %arg13[%c104, %c0_49] {strides = array<i32: 2, 1>} : memref<128x32xf32, #tpu.memory_space<vmem>>, vector<4x32xf32>
    %c105 = arith.constant 105 : index
    %c0_50 = arith.constant 0 : index
    %65 = tpu.strided_load %arg13[%c105, %c0_50] {strides = array<i32: 2, 1>} : memref<128x32xf32, #tpu.memory_space<vmem>>, vector<4x32xf32>
    %66 = arith.maximumf %62, %63 : vector<4x32xf32>
    %67 = arith.maximumf %64, %65 : vector<4x32xf32>
    %68 = arith.maximumf %66, %67 : vector<4x32xf32>
    %c51 = arith.constant 51 : index
    %c0_51 = arith.constant 0 : index
    %69 = vector.load %arg14[%c51, %c0_51] : memref<76x32xf32, #tpu.memory_space<vmem>>, vector<4x32xf32>
    tpu.vector_store %arg14[%c51, %c0_51], %68 {strides = array<i32>} : memref<76x32xf32, #tpu.memory_space<vmem>>, vector<4x32xf32>,
    %c112 = arith.constant 112 : index
    %c0_52 = arith.constant 0 : index
    %70 = tpu.strided_load %arg13[%c112, %c0_52] {strides = array<i32: 2, 1>} : memref<128x32xf32, #tpu.memory_space<vmem>>, vector<4x32xf32>
    %c113 = arith.constant 113 : index
    %c0_53 = arith.constant 0 : index
    %71 = tpu.strided_load %arg13[%c113, %c0_53] {strides = array<i32: 2, 1>} : memref<128x32xf32, #tpu.memory_space<vmem>>, vector<4x32xf32>
    %c120 = arith.constant 120 : index
    %c0_54 = arith.constant 0 : index
    %72 = tpu.strided_load %arg13[%c120, %c0_54] {strides = array<i32: 2, 1>} : memref<128x32xf32, #tpu.memory_space<vmem>>, vector<4x32xf32>
    %c121 = arith.constant 121 : index
    %c0_55 = arith.constant 0 : index
    %73 = tpu.strided_load %arg13[%c121, %c0_55] {strides = array<i32: 2, 1>} : memref<128x32xf32, #tpu.memory_space<vmem>>, vector<4x32xf32>
    %74 = arith.maximumf %70, %71 : vector<4x32xf32>
    %75 = arith.maximumf %72, %73 : vector<4x32xf32>
    %76 = arith.maximumf %74, %75 : vector<4x32xf32>
    %c57_56 = arith.constant 57 : index
    %c0_57 = arith.constant 0 : index
    %77 = vector.load %arg14[%c57_56, %c0_57] : memref<76x32xf32, #tpu.memory_space<vmem>>, vector<4x32xf32>
    tpu.vector_store %arg14[%c57_56, %c0_57], %76 {strides = array<i32>} : memref<76x32xf32, #tpu.memory_space<vmem>>, vector<4x32xf32>,
    %c7 = arith.constant 7 : index
    %c0_58 = arith.constant 0 : index
    %78 = vector.load %arg14[%c7, %c0_58] : memref<76x32xf32, #tpu.memory_space<vmem>>, vector<48x32xf32>
    %c8_59 = arith.constant 8 : index
    %c0_60 = arith.constant 0 : index
    %79 = vector.load %arg14[%c8_59, %c0_60] : memref<76x32xf32, #tpu.memory_space<vmem>>, vector<48x32xf32>
    %c9_61 = arith.constant 9 : index
    %c0_62 = arith.constant 0 : index
    %80 = vector.load %arg14[%c9_61, %c0_62] : memref<76x32xf32, #tpu.memory_space<vmem>>, vector<48x32xf32>
    %c13 = arith.constant 13 : index
    %c0_63 = arith.constant 0 : index
    %81 = vector.load %arg14[%c13, %c0_63] : memref<76x32xf32, #tpu.memory_space<vmem>>, vector<48x32xf32>
    %c14 = arith.constant 14 : index
    %c0_64 = arith.constant 0 : index
    %82 = vector.load %arg14[%c14, %c0_64] : memref<76x32xf32, #tpu.memory_space<vmem>>, vector<48x32xf32>
    %c15_65 = arith.constant 15 : index
    %c0_66 = arith.constant 0 : index
    %83 = vector.load %arg14[%c15_65, %c0_66] : memref<76x32xf32, #tpu.memory_space<vmem>>, vector<48x32xf32>
    %c19 = arith.constant 19 : index
    %c0_67 = arith.constant 0 : index
    %84 = vector.load %arg14[%c19, %c0_67] : memref<76x32xf32, #tpu.memory_space<vmem>>, vector<48x32xf32>
    %c20 = arith.constant 20 : index
    %c0_68 = arith.constant 0 : index
    %85 = vector.load %arg14[%c20, %c0_68] : memref<76x32xf32, #tpu.memory_space<vmem>>, vector<48x32xf32>
    %c21_69 = arith.constant 21 : index
    %c0_70 = arith.constant 0 : index
    %86 = vector.load %arg14[%c21_69, %c0_70] : memref<76x32xf32, #tpu.memory_space<vmem>>, vector<48x32xf32>
    %87 = tpu.concatenate %78, %79, %80, %81, %82, %83, %84, %85, %86 in 1 : vector<48x32xf32>, vector<48x32xf32>, vector<48x32xf32>, vector<48x32xf32>, vector<48x32xf32>, vector<48x32xf32>, vector<48x32xf32>, vector<48x32xf32>, vector<48x32xf32> -> vector<48x288xf32>
    %88 = arith.truncf %87 : vector<48x288xf32> to vector<48x288xbf16>
    %c0_71 = arith.constant 0 : index
    %c0_72 = arith.constant 0 : index
    %89 = vector.load %arg4[%c0_71, %c0_72] : memref<288x64xbf16, #tpu.memory_space<vmem>>, vector<288x64xbf16>
    %cst_73 = arith.constant dense<0.000000e+00> : vector<48x64xf32>
    %90 = tpu.matmul %88, %89, %cst_73 {dimension_numbers = #tpu.dot_dimension_numbers<[1], [0], [0], [1], [0, 0, 1, 1], [], []>} : vector<48x288xbf16>, vector<288x64xbf16>, vector<48x64xf32> -> vector<48x64xf32>
    %c0_74 = arith.constant 0 : index
    %c0_75 = arith.constant 0 : index
    %91 = vector.load %arg5[%c0_74, %c0_75] : memref<1x64xf32, #tpu.memory_space<vmem>>, vector<1x64xf32>
    %92 = vector.broadcast %91 : vector<1x64xf32> to vector<48x64xf32>
    %93 = arith.addf %90, %92 : vector<48x64xf32>
    %cst_76 = arith.constant 0.000000e+00 : f32
    %94 = vector.broadcast %cst_76 : f32 to vector<48x64xf32>
    %95 = arith.maximumf %93, %94 : vector<48x64xf32>
    %c0_77 = arith.constant 0 : index
    %c0_78 = arith.constant 0 : index
    %96 = vector.load %arg15[%c0_77, %c0_78] : memref<48x64xf32, #tpu.memory_space<vmem>>, vector<48x64xf32>
    tpu.vector_store %arg15[%c0_77, %c0_78], %95 {strides = array<i32>} : memref<48x64xf32, #tpu.memory_space<vmem>>, vector<48x64xf32>,
    %c1_79 = arith.constant 1 : index
    %c0_80 = arith.constant 0 : index
    %97 = tpu.strided_load %arg15[%c1_79, %c0_80] {strides = array<i32: 2, 1>} : memref<48x64xf32, #tpu.memory_space<vmem>>, vector<2x64xf32>
    %c2 = arith.constant 2 : index
    %c0_81 = arith.constant 0 : index
    %98 = tpu.strided_load %arg15[%c2, %c0_81] {strides = array<i32: 2, 1>} : memref<48x64xf32, #tpu.memory_space<vmem>>, vector<2x64xf32>
    %c7_82 = arith.constant 7 : index
    %c0_83 = arith.constant 0 : index
    %99 = tpu.strided_load %arg15[%c7_82, %c0_83] {strides = array<i32: 2, 1>} : memref<48x64xf32, #tpu.memory_space<vmem>>, vector<2x64xf32>
    %c8_84 = arith.constant 8 : index
    %c0_85 = arith.constant 0 : index
    %100 = tpu.strided_load %arg15[%c8_84, %c0_85] {strides = array<i32: 2, 1>} : memref<48x64xf32, #tpu.memory_space<vmem>>, vector<2x64xf32>
    %101 = arith.maximumf %97, %98 : vector<2x64xf32>
    %102 = arith.maximumf %99, %100 : vector<2x64xf32>
    %103 = arith.maximumf %101, %102 : vector<2x64xf32>
    %c13_86 = arith.constant 13 : index
    %c0_87 = arith.constant 0 : index
    %104 = vector.load %arg16[%c13_86, %c0_87] : memref<40x64xf32, #tpu.memory_space<vmem>>, vector<2x64xf32>
    tpu.vector_store %arg16[%c13_86, %c0_87], %103 {strides = array<i32>} : memref<40x64xf32, #tpu.memory_space<vmem>>, vector<2x64xf32>,
    %c13_88 = arith.constant 13 : index
    %c0_89 = arith.constant 0 : index
    %105 = tpu.strided_load %arg15[%c13_88, %c0_89] {strides = array<i32: 2, 1>} : memref<48x64xf32, #tpu.memory_space<vmem>>, vector<2x64xf32>
    %c14_90 = arith.constant 14 : index
    %c0_91 = arith.constant 0 : index
    %106 = tpu.strided_load %arg15[%c14_90, %c0_91] {strides = array<i32: 2, 1>} : memref<48x64xf32, #tpu.memory_space<vmem>>, vector<2x64xf32>
    %c19_92 = arith.constant 19 : index
    %c0_93 = arith.constant 0 : index
    %107 = tpu.strided_load %arg15[%c19_92, %c0_93] {strides = array<i32: 2, 1>} : memref<48x64xf32, #tpu.memory_space<vmem>>, vector<2x64xf32>
    %c20_94 = arith.constant 20 : index
    %c0_95 = arith.constant 0 : index
    %108 = tpu.strided_load %arg15[%c20_94, %c0_95] {strides = array<i32: 2, 1>} : memref<48x64xf32, #tpu.memory_space<vmem>>, vector<2x64xf32>
    %109 = arith.maximumf %105, %106 : vector<2x64xf32>
    %110 = arith.maximumf %107, %108 : vector<2x64xf32>
    %111 = arith.maximumf %109, %110 : vector<2x64xf32>
    %c17_96 = arith.constant 17 : index
    %c0_97 = arith.constant 0 : index
    %112 = vector.load %arg16[%c17_96, %c0_97] : memref<40x64xf32, #tpu.memory_space<vmem>>, vector<2x64xf32>
    tpu.vector_store %arg16[%c17_96, %c0_97], %111 {strides = array<i32>} : memref<40x64xf32, #tpu.memory_space<vmem>>, vector<2x64xf32>,
    %c25_98 = arith.constant 25 : index
    %c0_99 = arith.constant 0 : index
    %113 = tpu.strided_load %arg15[%c25_98, %c0_99] {strides = array<i32: 2, 1>} : memref<48x64xf32, #tpu.memory_space<vmem>>, vector<2x64xf32>
    %c26 = arith.constant 26 : index
    %c0_100 = arith.constant 0 : index
    %114 = tpu.strided_load %arg15[%c26, %c0_100] {strides = array<i32: 2, 1>} : memref<48x64xf32, #tpu.memory_space<vmem>>, vector<2x64xf32>
    %c31 = arith.constant 31 : index
    %c0_101 = arith.constant 0 : index
    %115 = tpu.strided_load %arg15[%c31, %c0_101] {strides = array<i32: 2, 1>} : memref<48x64xf32, #tpu.memory_space<vmem>>, vector<2x64xf32>
    %c32_102 = arith.constant 32 : index
    %c0_103 = arith.constant 0 : index
    %116 = tpu.strided_load %arg15[%c32_102, %c0_103] {strides = array<i32: 2, 1>} : memref<48x64xf32, #tpu.memory_space<vmem>>, vector<2x64xf32>
    %117 = arith.maximumf %113, %114 : vector<2x64xf32>
    %118 = arith.maximumf %115, %116 : vector<2x64xf32>
    %119 = arith.maximumf %117, %118 : vector<2x64xf32>
    %c21_104 = arith.constant 21 : index
    %c0_105 = arith.constant 0 : index
    %120 = vector.load %arg16[%c21_104, %c0_105] : memref<40x64xf32, #tpu.memory_space<vmem>>, vector<2x64xf32>
    tpu.vector_store %arg16[%c21_104, %c0_105], %119 {strides = array<i32>} : memref<40x64xf32, #tpu.memory_space<vmem>>, vector<2x64xf32>,
    %c37 = arith.constant 37 : index
    %c0_106 = arith.constant 0 : index
    %121 = tpu.strided_load %arg15[%c37, %c0_106] {strides = array<i32: 2, 1>} : memref<48x64xf32, #tpu.memory_space<vmem>>, vector<2x64xf32>
    %c38 = arith.constant 38 : index
    %c0_107 = arith.constant 0 : index
    %122 = tpu.strided_load %arg15[%c38, %c0_107] {strides = array<i32: 2, 1>} : memref<48x64xf32, #tpu.memory_space<vmem>>, vector<2x64xf32>
    %c43 = arith.constant 43 : index
    %c0_108 = arith.constant 0 : index
    %123 = tpu.strided_load %arg15[%c43, %c0_108] {strides = array<i32: 2, 1>} : memref<48x64xf32, #tpu.memory_space<vmem>>, vector<2x64xf32>
    %c44 = arith.constant 44 : index
    %c0_109 = arith.constant 0 : index
    %124 = tpu.strided_load %arg15[%c44, %c0_109] {strides = array<i32: 2, 1>} : memref<48x64xf32, #tpu.memory_space<vmem>>, vector<2x64xf32>
    %125 = arith.maximumf %121, %122 : vector<2x64xf32>
    %126 = arith.maximumf %123, %124 : vector<2x64xf32>
    %127 = arith.maximumf %125, %126 : vector<2x64xf32>
    %c25_110 = arith.constant 25 : index
    %c0_111 = arith.constant 0 : index
    %128 = vector.load %arg16[%c25_110, %c0_111] : memref<40x64xf32, #tpu.memory_space<vmem>>, vector<2x64xf32>
    tpu.vector_store %arg16[%c25_110, %c0_111], %127 {strides = array<i32>} : memref<40x64xf32, #tpu.memory_space<vmem>>, vector<2x64xf32>,
    %c7_112 = arith.constant 7 : index
    %c0_113 = arith.constant 0 : index
    %129 = vector.load %arg16[%c7_112, %c0_113] : memref<40x64xf32, #tpu.memory_space<vmem>>, vector<16x64xf32>
    %c8_114 = arith.constant 8 : index
    %c0_115 = arith.constant 0 : index
    %130 = vector.load %arg16[%c8_114, %c0_115] : memref<40x64xf32, #tpu.memory_space<vmem>>, vector<16x64xf32>
    %c9_116 = arith.constant 9 : index
    %c0_117 = arith.constant 0 : index
    %131 = vector.load %arg16[%c9_116, %c0_117] : memref<40x64xf32, #tpu.memory_space<vmem>>, vector<16x64xf32>
    %c11 = arith.constant 11 : index
    %c0_118 = arith.constant 0 : index
    %132 = vector.load %arg16[%c11, %c0_118] : memref<40x64xf32, #tpu.memory_space<vmem>>, vector<16x64xf32>
    %c12 = arith.constant 12 : index
    %c0_119 = arith.constant 0 : index
    %133 = vector.load %arg16[%c12, %c0_119] : memref<40x64xf32, #tpu.memory_space<vmem>>, vector<16x64xf32>
    %c13_120 = arith.constant 13 : index
    %c0_121 = arith.constant 0 : index
    %134 = vector.load %arg16[%c13_120, %c0_121] : memref<40x64xf32, #tpu.memory_space<vmem>>, vector<16x64xf32>
    %c15_122 = arith.constant 15 : index
    %c0_123 = arith.constant 0 : index
    %135 = vector.load %arg16[%c15_122, %c0_123] : memref<40x64xf32, #tpu.memory_space<vmem>>, vector<16x64xf32>
    %c16_124 = arith.constant 16 : index
    %c0_125 = arith.constant 0 : index
    %136 = vector.load %arg16[%c16_124, %c0_125] : memref<40x64xf32, #tpu.memory_space<vmem>>, vector<16x64xf32>
    %c17_126 = arith.constant 17 : index
    %c0_127 = arith.constant 0 : index
    %137 = vector.load %arg16[%c17_126, %c0_127] : memref<40x64xf32, #tpu.memory_space<vmem>>, vector<16x64xf32>
    %138 = tpu.concatenate %129, %130, %131, %132, %133, %134, %135, %136, %137 in 1 : vector<16x64xf32>, vector<16x64xf32>, vector<16x64xf32>, vector<16x64xf32>, vector<16x64xf32>, vector<16x64xf32>, vector<16x64xf32>, vector<16x64xf32>, vector<16x64xf32> -> vector<16x576xf32>
    %139 = arith.truncf %138 : vector<16x576xf32> to vector<16x576xbf16>
    %c0_128 = arith.constant 0 : index
    %c0_129 = arith.constant 0 : index
    %140 = vector.load %arg6[%c0_128, %c0_129] : memref<576x128xbf16, #tpu.memory_space<vmem>>, vector<576x128xbf16>
    %cst_130 = arith.constant dense<0.000000e+00> : vector<16x128xf32>
    %141 = tpu.matmul %139, %140, %cst_130 {dimension_numbers = #tpu.dot_dimension_numbers<[1], [0], [0], [1], [0, 0, 1, 1], [], []>} : vector<16x576xbf16>, vector<576x128xbf16>, vector<16x128xf32> -> vector<16x128xf32>
    %c0_131 = arith.constant 0 : index
    %c0_132 = arith.constant 0 : index
    %142 = vector.load %arg7[%c0_131, %c0_132] : memref<1x128xf32, #tpu.memory_space<vmem>>, vector<1x128xf32>
    %143 = vector.broadcast %142 : vector<1x128xf32> to vector<16x128xf32>
    %144 = arith.addf %141, %143 : vector<16x128xf32>
    %cst_133 = arith.constant 0.000000e+00 : f32
    %145 = vector.broadcast %cst_133 : f32 to vector<16x128xf32>
    %146 = arith.maximumf %144, %145 : vector<16x128xf32>
    %c0_134 = arith.constant 0 : index
    %c0_135 = arith.constant 0 : index
    %147 = vector.load %arg17[%c0_134, %c0_135] : memref<16x128xf32, #tpu.memory_space<vmem>>, vector<16x128xf32>
    tpu.vector_store %arg17[%c0_134, %c0_135], %146 {strides = array<i32>} : memref<16x128xf32, #tpu.memory_space<vmem>>, vector<16x128xf32>,
    %c0_136 = arith.constant 0 : index
    %c0_137 = arith.constant 0 : index
    %148 = vector.load %arg9[%c0_136, %c0_137] : memref<1x128xf32, #tpu.memory_space<vmem>>, vector<1x128xf32>
    %c1_138 = arith.constant 1 : index
    %c0_139 = arith.constant 0 : index
    %149 = vector.load %arg17[%c1_138, %c0_139] : memref<16x128xf32, #tpu.memory_space<vmem>>, vector<1x128xf32>
    %c2_140 = arith.constant 2 : index
    %c0_141 = arith.constant 0 : index
    %150 = vector.load %arg17[%c2_140, %c0_141] : memref<16x128xf32, #tpu.memory_space<vmem>>, vector<1x128xf32>
    %c5 = arith.constant 5 : index
    %c0_142 = arith.constant 0 : index
    %151 = vector.load %arg17[%c5, %c0_142] : memref<16x128xf32, #tpu.memory_space<vmem>>, vector<1x128xf32>
    %c6 = arith.constant 6 : index
    %c0_143 = arith.constant 0 : index
    %152 = vector.load %arg17[%c6, %c0_143] : memref<16x128xf32, #tpu.memory_space<vmem>>, vector<1x128xf32>
    %153 = arith.maximumf %149, %150 : vector<1x128xf32>
    %154 = arith.maximumf %151, %152 : vector<1x128xf32>
    %155 = arith.maximumf %153, %154 : vector<1x128xf32>
    %156 = arith.truncf %155 : vector<1x128xf32> to vector<1x128xbf16>
    %c0_144 = arith.constant 0 : index
    %c0_145 = arith.constant 0 : index
    %157 = vector.load %arg8[%c0_144, %c0_145] : memref<256x128xbf16, #tpu.memory_space<vmem>>, vector<128x128xbf16>
    %cst_146 = arith.constant dense<0.000000e+00> : vector<1x128xf32>
    %158 = tpu.matmul %156, %157, %cst_146 {dimension_numbers = #tpu.dot_dimension_numbers<[1], [0], [0], [1], [0, 0, 1, 1], [], []>} : vector<1x128xbf16>, vector<128x128xbf16>, vector<1x128xf32> -> vector<1x128xf32>
    %159 = arith.addf %148, %158 : vector<1x128xf32>
    %c9_147 = arith.constant 9 : index
    %c0_148 = arith.constant 0 : index
    %160 = vector.load %arg17[%c9_147, %c0_148] : memref<16x128xf32, #tpu.memory_space<vmem>>, vector<1x128xf32>
    %c10 = arith.constant 10 : index
    %c0_149 = arith.constant 0 : index
    %161 = vector.load %arg17[%c10, %c0_149] : memref<16x128xf32, #tpu.memory_space<vmem>>, vector<1x128xf32>
    %c13_150 = arith.constant 13 : index
    %c0_151 = arith.constant 0 : index
    %162 = vector.load %arg17[%c13_150, %c0_151] : memref<16x128xf32, #tpu.memory_space<vmem>>, vector<1x128xf32>
    %c14_152 = arith.constant 14 : index
    %c0_153 = arith.constant 0 : index
    %163 = vector.load %arg17[%c14_152, %c0_153] : memref<16x128xf32, #tpu.memory_space<vmem>>, vector<1x128xf32>
    %164 = arith.maximumf %160, %161 : vector<1x128xf32>
    %165 = arith.maximumf %162, %163 : vector<1x128xf32>
    %166 = arith.maximumf %164, %165 : vector<1x128xf32>
    %167 = arith.truncf %166 : vector<1x128xf32> to vector<1x128xbf16>
    %c128 = arith.constant 128 : index
    %c0_154 = arith.constant 0 : index
    %168 = vector.load %arg8[%c128, %c0_154] : memref<256x128xbf16, #tpu.memory_space<vmem>>, vector<128x128xbf16>
    %cst_155 = arith.constant dense<0.000000e+00> : vector<1x128xf32>
    %169 = tpu.matmul %167, %168, %cst_155 {dimension_numbers = #tpu.dot_dimension_numbers<[1], [0], [0], [1], [0, 0, 1, 1], [], []>} : vector<1x128xbf16>, vector<128x128xbf16>, vector<1x128xf32> -> vector<1x128xf32>
    %170 = arith.addf %159, %169 : vector<1x128xf32>
    %cst_156 = arith.constant 0.000000e+00 : f32
    %171 = vector.broadcast %cst_156 : f32 to vector<1x128xf32>
    %172 = arith.maximumf %170, %171 : vector<1x128xf32>
    %c0_157 = arith.constant 0 : index
    %c0_158 = arith.constant 0 : index
    %173 = vector.load %arg10[%c0_157, %c0_158] : memref<128x2xf32, #tpu.memory_space<vmem>>, vector<128x2xf32>
    %cst_159 = arith.constant dense<0.000000e+00> : vector<1x2xf32>
    %174 = tpu.matmul %172, %173, %cst_159 {dimension_numbers = #tpu.dot_dimension_numbers<[1], [0], [0], [1], [0, 0, 1, 1], [], []>} : vector<1x128xf32>, vector<128x2xf32>, vector<1x2xf32> -> vector<1x2xf32>
    %c0_160 = arith.constant 0 : index
    %c0_161 = arith.constant 0 : index
    %175 = vector.load %arg11[%c0_160, %c0_161] : memref<1x2xf32, #tpu.memory_space<vmem>>, vector<1x2xf32>
    %176 = arith.addf %174, %175 : vector<1x2xf32>
    %177 = vector.shape_cast %176 : vector<1x2xf32> to vector<1x1x2xf32>
    %c0_162 = arith.constant 0 : index
    %c0_163 = arith.constant 0 : index
    %c0_164 = arith.constant 0 : index
    %178 = vector.load %arg12[%c0_162, %c0_163, %c0_164] : memref<1x1x2xf32, #tpu.memory_space<vmem>>, vector<1x1x2xf32>
    tpu.vector_store %arg12[%c0_162, %c0_163, %c0_164], %177 {strides = array<i32>} : memref<1x1x2xf32, #tpu.memory_space<vmem>>, vector<1x1x2xf32>,
    return
  }
  func.func @transform_0(%arg0: i32) -> (i32, i32, i32) {
    %c0_i32 = arith.constant 0 : i32
    %c0_i32_0 = arith.constant 0 : i32
    %c0_i32_1 = arith.constant 0 : i32
    return %arg0, %c0_i32, %c0_i32_0 : i32, i32, i32
  }
  func.func @transform_1(%arg0: i32) -> (i32, i32) {
    %c0_i32 = arith.constant 0 : i32
    %c0_i32_0 = arith.constant 0 : i32
    %c0_i32_1 = arith.constant 0 : i32
    return %c0_i32, %c0_i32_0 : i32, i32
  }
  func.func @transform_2(%arg0: i32) -> (i32, i32) {
    %c0_i32 = arith.constant 0 : i32
    %c0_i32_0 = arith.constant 0 : i32
    %c0_i32_1 = arith.constant 0 : i32
    return %c0_i32, %c0_i32_0 : i32, i32
  }
  func.func @transform_3(%arg0: i32) -> (i32, i32) {
    %c0_i32 = arith.constant 0 : i32
    %c0_i32_0 = arith.constant 0 : i32
    %c0_i32_1 = arith.constant 0 : i32
    return %c0_i32, %c0_i32_0 : i32, i32
  }
  func.func @transform_4(%arg0: i32) -> (i32, i32) {
    %c0_i32 = arith.constant 0 : i32
    %c0_i32_0 = arith.constant 0 : i32
    %c0_i32_1 = arith.constant 0 : i32
    return %c0_i32, %c0_i32_0 : i32, i32
  }
  func.func @transform_5(%arg0: i32) -> (i32, i32) {
    %c0_i32 = arith.constant 0 : i32
    %c0_i32_0 = arith.constant 0 : i32
    %c0_i32_1 = arith.constant 0 : i32
    return %c0_i32, %c0_i32_0 : i32, i32
  }
  func.func @transform_6(%arg0: i32) -> (i32, i32) {
    %c0_i32 = arith.constant 0 : i32
    %c0_i32_0 = arith.constant 0 : i32
    %c0_i32_1 = arith.constant 0 : i32
    return %c0_i32, %c0_i32_0 : i32, i32
  }
  func.func @transform_7(%arg0: i32) -> (i32, i32) {
    %c0_i32 = arith.constant 0 : i32
    %c0_i32_0 = arith.constant 0 : i32
    %c0_i32_1 = arith.constant 0 : i32
    return %c0_i32, %c0_i32_0 : i32, i32
  }
  func.func @transform_8(%arg0: i32) -> (i32, i32) {
    %c0_i32 = arith.constant 0 : i32
    %c0_i32_0 = arith.constant 0 : i32
    %c0_i32_1 = arith.constant 0 : i32
    return %c0_i32, %c0_i32_0 : i32, i32
  }
  func.func @transform_9(%arg0: i32) -> (i32, i32) {
    %c0_i32 = arith.constant 0 : i32
    %c0_i32_0 = arith.constant 0 : i32
    %c0_i32_1 = arith.constant 0 : i32
    return %c0_i32, %c0_i32_0 : i32, i32
  }
  func.func @transform_10(%arg0: i32) -> (i32, i32) {
    %c0_i32 = arith.constant 0 : i32
    %c0_i32_0 = arith.constant 0 : i32
    %c0_i32_1 = arith.constant 0 : i32
    return %c0_i32, %c0_i32_0 : i32, i32
  }
  func.func @transform_11(%arg0: i32) -> (i32, i32, i32) {
    %c0_i32 = arith.constant 0 : i32
    %c0_i32_0 = arith.constant 0 : i32
    %c0_i32_1 = arith.constant 0 : i32
    return %arg0, %c0_i32, %c0_i32_0 : i32, i32, i32
  }
}

</mosaic_0001>

<bundles_post_ra>
// kernel: cnn_forward.1
= control target key start
LH: loop header
LB: loop body
LE: loop exit
PB: predicated region body
PF: predicated region fallthrough
CT: control target
= control target key end

     0   :  { %s3560_s0 = inlined_call_operand.vmem [shape: f32[2,128,16], index: 0, kind: input, shape index: {}]   ;;  %s3561_s1 = inlined_call_operand.vmem [shape: f32[16,32], index: 1, kind: input, shape index: {}]   ;;  %s3562_s2 = inlined_call_operand.vmem [shape: f32[1,32], index: 2, kind: input, shape index: {}]   ;;  %s3563_s3 = inlined_call_operand.vmem [shape: bf16[288,64], index: 3, kind: input, shape index: {}]   ;;  %s3564_s4 = inlined_call_operand.vmem [shape: f32[1,64], index: 4, kind: input, shape index: {}]   ;;  %s3565_s5 = inlined_call_operand.vmem [shape: bf16[576,128], index: 5, kind: input, shape index: {}]   ;;  %s3566_s6 = inlined_call_operand.vmem [shape: f32[1,128], index: 6, kind: input, shape index: {}]   ;;  %s3567_s7 = inlined_call_operand.vmem [shape: bf16[256,128], index: 7, kind: input, shape index: {}]   ;;  %s3568_s8 = inlined_call_operand.vmem [shape: f32[1,128], index: 8, kind: input, shape index: {}]   ;;  %s3569_s9 = inlined_call_operand.vmem [shape: f32[128,2], index: 9, kind: input, shape index: {}]   ;;  %s3570_s10 = inlined_call_operand.vmem [shape: f32[1,2], index: 10, kind: input, shape index: {}]   ;;  %s3571_s11 = inlined_call_operand.hbm [shape: f32[2,1,2], index: 11, kind: output, shape index: {}]  }
   0x1   :  { %3574 = sst [smem:[#allocation10_spill]] %s3560_s0 }
   0x2   :  { %16 = vsyncpa [#allocation8], 0 }
   0x3   :  { %18 = vsyncpa [#allocation8 + $0x1], 0  ;;  %s2942_s17 = smov 0   ;;  %s2944_s18 = smov 0  }
   0x4   :  { %s2946_s19 = smov 0   ;;  %s2948_s20 = smov 0  }
   0x5 LB: > { %s2963_s21 = sadd.s32 4294967295, %s2873_s20   ;;  %s2183_s22 = sadd.s32 4294967294, %s2873_s20   ;;  %s2873_s20 = sphi %s2948_s20, %s3582_s20   ;;  %s2869_s19 = sphi %s2946_s19, %s3581_s19   ;;  %s2865_s18 = sphi %s2944_s18, %s3580_s18   ;;  %s2861_s17 = sphi %s2942_s17, %s3579_s17  }
   0x6   : > { %s2967_s23 = sadd.s32 1, %s2873_s20   ;;  %s267_s24 = sadd.s32 1, %s2869_s19 }
   0x7   : > { %s264_s25 = ssub.s32 %s2873_s20, %s2967_s23  ;;  %p277_p0 = scmp.ne.s32.totalorder %s2869_s19, %s2865_s18 }
   0x8   : > { %p265_p1 = scmp.eq.s32.totalorder %s264_s25, 0  ;;  %p278_p2 = scmp.eq.s32.totalorder %s2963_s21, 1 }
   0x9   : > { %p283_p3 = scmp.ne.s32.totalorder %s2865_s18, %s2861_s17  ;;  %p284_p4 = scmp.eq.s32.totalorder %s2183_s22, 1 }
   0xa   : > { %s2978_s26 = scalar_select %p265_p1, %s2869_s19, %s267_s24  }
   0xb   : > { %p2980_p5 = por %p278_p2, %p277_p0  ;;  %p2984_p6 = por %p284_p4, %p283_p3 }
   0xc   : > { %p2186_p7 = scmp.ge.s32.totalorder %s2873_s20, 1  ;;  %p340_p8 = scmp.lt.s32.totalorder %s2873_s20, 3 }
   0xe   : > { %p341_p9 = pnand %p2186_p7, %p340_p8 }
   0xf   : > { %v419_v0 = vld [vmem:[%s3561_s1] sm:$0xff] (!%p341_p9)  ;;  %v420_v1 = vld [vmem:[%s3561_s1 + $0x8] sm:$0xff] (!%p341_p9)  ;;  %p379_p10 = scmp.lt.s32.totalorder (!%p341_p9), %s2963_s21, 1  ;;  %vm428_vm0 = vcmask (!%p341_p9), 130048   ;;  %s3577_s0 = sld [smem:[#allocation10_spill]] (!%p341_p9)  ;;  %vm385_vm1 = vcmask (!%p341_p9), 261120  }
  0x10   : > { %344 = sbr.rel (%p341_p9) target bundleno = 1522 (0x5f2), region = 64  ;;  %v2558_v2 = vpack.c.bf16 (!%p341_p9), %v420_v1, %v419_v0  ;;  %v2875_v19 = vmov (!%p341_p9), 0.0   ;;  %vm395_vm2 = vcmask (!%p341_p9), 257024   ;;  %v2741_v20 = vld [vmem:[%s3563_s3 + $0x80] sm:$0xff] (!%p341_p9)   ;;  %v2742_v21 = vld [vmem:[%s3563_s3 + $0x88] sm:$0xff] (!%p341_p9)   ;;  %vm2876_vm3 = vmmov (!%p341_p9), 0  }
  0x11   : > { %2455 = vmatprep.subr.bf16.mxu0 (!%p341_p9), %v2875_v19  ;;  %386 = vst.msk [vmem:[#allocation3] sm:$0xff] (!%p341_p9), %vm385_vm1, %v2875_v19  ;;  %387 = vst.msk [vmem:[#allocation3 + $0x8] sm:$0xff] (!%p341_p9), %vm385_vm1, %v2875_v19  ;;  %2459 = vmatprep.mubr.msk.bf16.mxu0 (!%p341_p9), %vm2876_vm3, %v2875_v19  ;;  %v2743_v22 = vld [vmem:[%s3563_s3 + $0x40] sm:$0xff] (!%p341_p9)   ;;  %v2745_v24 = vld [vmem:[%s3563_s3 + $0x48] sm:$0xff] (!%p341_p9)   ;;  %vm397_vm4 = vcmask (!%p341_p9), 523264   ;;  %s3572_s25 = smov (!%p341_p9), 64  }
  0x12   : > { %2559 = vmatprep.subr.bf16.mxu1 (!%p341_p9), %v2558_v2  ;;  %388 = vst.msk [vmem:[#allocation3 + $0x10] sm:$0xff] (!%p341_p9), %vm385_vm1, %v2875_v19  ;;  %389 = vst.msk [vmem:[#allocation3 + $0x18] sm:$0xff] (!%p341_p9), %vm385_vm1, %v2875_v19  ;;  %2456 = vmatpush3.bf16.msra.mxu0 (!%p341_p9), %v2741_v20  ;;  %v2744_v23 = vld [vmem:[%s3563_s3] sm:$0xff] (!%p341_p9)   ;;  %v2746_v25 = vld [vmem:[%s3563_s3 + $0x8] sm:$0xff] (!%p341_p9)   ;;  %s2878_s29 = smov (!%p341_p9), 32   ;;  %s2879_s22 = smov (!%p341_p9), 96  }
  0x13   : > { %2561 = vmatpush3.bf16.msra.mxu1 (!%p341_p9), %v2558_v2  ;;  %390 = vst.msk [vmem:[#allocation3 + $0x20] sm:$0xff] (!%p341_p9), %vm385_vm1, %v2875_v19  ;;  %391 = vst.msk [vmem:[#allocation3 + $0x28] sm:$0xff] (!%p341_p9), %vm385_vm1, %v2875_v19  ;;  %2457 = vmatprep.subr.bf16.mxu0 (!%p341_p9), %v2875_v19  ;;  %v2747_v26 = vld [vmem:[%s3563_s3 + $0x50] sm:$0xff] (!%p341_p9)   ;;  %v2749_v28 = vld [vmem:[%s3563_s3 + $0x58] sm:$0xff] (!%p341_p9)   ;;  %vm949_vm5 = vcmask (!%p341_p9), 785408   ;;  %vm1280_vm6 = vcmask (!%p341_p9), 517120  }
  0x14   : > { %392 = vst.msk [vmem:[#allocation3 + $0x30] sm:$0xff] (!%p341_p9), %vm385_vm1, %v2875_v19  ;;  %393 = vst.msk [vmem:[#allocation3 + $0x38] sm:$0xff] (!%p341_p9), %vm385_vm1, %v2875_v19  ;;  %2304 = vmatprep.subr.bf16.mxu1 (!%p341_p9), %v2743_v22  ;;  %v2748_v27 = vld [vmem:[%s3563_s3 + $0x10] sm:$0xff] (!%p341_p9)   ;;  %v2750_v29 = vld [vmem:[%s3563_s3 + $0x18] sm:$0xff] (!%p341_p9)   ;;  %vm2113_vm7 = vcmask (!%p341_p9), 8192  }
  0x15   : > { %394 = vst.msk [vmem:[#allocation3 + $0x40] sm:$0xff] (!%p341_p9), %vm385_vm1, %v2875_v19  ;;  %v2751_v30 = vld [vmem:[%s3563_s3 + $0x60] sm:$0xff] (!%p341_p9)  }
  0x16   : > { %2458 = vmatpush3.bf16.msra.mxu0 (!%p341_p9), %v2742_v21  ;;  %v3075_v31 = vld [vmem:[%s3562_s2] ss:$0 sm:$0xff] (!%p341_p9)  ;;  %398 = vst.msk [vmem:[#allocation5] sm:$0xff] (!%p341_p9), %vm397_vm4, %v2875_v19  ;;  %399 = vst.msk [vmem:[#allocation5 + $0x8] sm:$0xff] (!%p341_p9), %vm397_vm4, %v2875_v19 }
  0x17   : > { %s380_s14 = scalar_select %p379_p10, %s2963_s21, 1  ;;  %400 = vst.msk [vmem:[#allocation5 + $0x10] sm:$0xff] %vm397_vm4, %v2875_v19  ;;  %401 = vst.msk [vmem:[#allocation5 + $0x18] sm:$0xff] %vm397_vm4, %v2875_v19 }
  0x18   : > { %402 = vst.msk [vmem:[#allocation5 + $0x20] sm:$0xff] %vm397_vm4, %v2875_v19 }
  0x19   : > { %s2285_s15 = sshll.u32 %s380_s14, 7  ;;  %s2282_s14 = sshll.u32 %s2963_s21, 4 }
  0x1a   : > { %s383_s24 = scalar_lea.vmem %s3577_s0, %s2285_s15  ;;  %s3518_s0 = scalar_lea.hbm %s3571_s11, %s2282_s14 }
  0x1b   : > { %v403_v3 = vld [vmem:[%s383_s24] sm:$0xff]  ;;  %v404_v4 = vld [vmem:[%s383_s24 + $0x8] sm:$0xff]  ;;  %v405_v5 = vld [vmem:[%s383_s24 + $0x10] sm:$0xff]  ;;  %s2881_s21 = smov [#allocation7]  }
  0x1c   : > { %2431 = vmatprep.mubr.msk.f32.mxu1 %vm428_vm0, %v403_v3  ;;  %v406_v6 = vld [vmem:[%s383_s24 + $0x18] sm:$0xff]  ;;  %v407_v7 = vld [vmem:[%s383_s24 + $0x20] sm:$0xff]  ;;  %v408_v8 = vld [vmem:[%s383_s24 + $0x28] sm:$0xff]  ;;  %s2815_s12 = sshll.u32 %s2881_s21, 4  ;;  %s2816_s12 = int_to_ptr.vmem [resolvable:$false] %s2815_s12 }
  0x1d   : > { %2432 = vmatmul.mubr.msk.f32.vlgmr.msra.gmra.mrb[0].mxu1 %vm428_vm0, %v404_v4  ;;  %v409_v9 = vld [vmem:[%s383_s24 + $0x30] sm:$0xff]  ;;  %v410_v10 = vld [vmem:[%s383_s24 + $0x38] sm:$0xff]  ;;  %v411_v11 = vld [vmem:[%s383_s24 + $0x40] sm:$0xff]  ;;  %s2817_s13 = scalar_lea.vmem %s2816_s12, 32 }
  0x1e   : > { %2434 = vmatprep.mubr.msk.f32.mxu1 %vm428_vm0, %v405_v5  ;;  %v412_v12 = vld [vmem:[%s383_s24 + $0x48] sm:$0xff]  ;;  %v413_v13 = vld [vmem:[%s383_s24 + $0x50] sm:$0xff]  ;;  %v414_v14 = vld [vmem:[%s383_s24 + $0x58] sm:$0xff]  ;;  %2305 = vmatpush3.bf16.msra.mxu1 %v2744_v23 }
  0x1f   : > { %v415_v15 = vld [vmem:[%s383_s24 + $0x60] sm:$0xff]  ;;  %v416_v16 = vld [vmem:[%s383_s24 + $0x68] sm:$0xff]  ;;  %v417_v17 = vld [vmem:[%s383_s24 + $0x70] sm:$0xff]  ;;  %2306 = vmatprep.subr.bf16.mxu1 %v2745_v24 }
  0x20   : > { %v418_v18 = vld [vmem:[%s383_s24 + $0x78] sm:$0xff] }
  0x21   : > { %2435 = vmatmul.mubr.msk.f32.gmra.mrb[2].mxu1 %vm428_vm0, %v406_v6 }
  0x22   : > { %2437 = vmatprep.mubr.msk.f32.mxu1 %vm428_vm0, %v407_v7  ;;  %2307 = vmatpush3.bf16.msra.mxu1 %v2746_v25 }
  0x23   : > { %2308 = vmatprep.subr.bf16.mxu1 %v2747_v26 }
  0x25   : > { %2438 = vmatmul.mubr.msk.f32.gmra.mrb[4].mxu1 %vm428_vm0, %v408_v8 }
  0x26   : > { %2440 = vmatprep.mubr.msk.f32.mxu1 %vm428_vm0, %v409_v9  ;;  %2309 = vmatpush3.bf16.msra.mxu1 %v2748_v27 }
  0x27   : > { %2310 = vmatprep.subr.bf16.mxu1 %v2749_v28 }
  0x29   : > { %2441 = vmatmul.mubr.msk.f32.gmra.mrb[6].mxu1 %vm428_vm0, %v410_v10 }
  0x2a   : > { %2443 = vmatprep.mubr.msk.f32.mxu1 %vm428_vm0, %v411_v11  ;;  %2311 = vmatpush3.bf16.msra.mxu1 %v2750_v29 }
  0x2b   : > { %2312 = vmatprep.subr.bf16.mxu1 %v2751_v30 }
  0x2d   : > { %2444 = vmatmul.mubr.msk.f32.gmra.mrb[8].mxu1 %vm428_vm0, %v412_v12 }
  0x2e   : > { %2446 = vmatprep.mubr.msk.f32.mxu1 %vm428_vm0, %v413_v13 }
  0x31   : > { %2447 = vmatmul.mubr.msk.f32.gmra.mrb[10].mxu1 %vm428_vm0, %v414_v14  ;;  %v2752_v14 = vld [vmem:[%s3563_s3 + $0x20] sm:$0xff]  }
  0x32   : > { %2449 = vmatprep.mubr.msk.f32.mxu1 %vm428_vm0, %v415_v15  ;;  %v2753_v15 = vld [vmem:[%s3563_s3 + $0x68] sm:$0xff]   ;;  %2313 = vmatpush3.bf16.msra.mxu1 %v2752_v14 }
  0x33   : > { %2314 = vmatprep.subr.bf16.mxu1 %v2753_v15 }
  0x35   : > { %2450 = vmatmul.mubr.msk.f32.gmra.mrb[12].mxu1 %vm428_vm0, %v416_v16 }
  0x36   : > { %2452 = vmatprep.mubr.msk.f32.mxu1 %vm428_vm0, %v417_v17 }
  0x39   : > { %2453 = vmatmul.mubr.msk.f32.gmra.mrb[14].mxu1 %vm428_vm0, %v418_v18 }
  0xf0   : > { %v2433_v32 = vpop.f32.mrb[0].mxu1 }
  0xf1   : > { %v549_v33 = vadd.f32 %v2433_v32, %v3075_v31  ;;  %v543_v34 = vpop.f32.mrb[1].mxu1 }
  0xf2   : > { %v544_v35 = vadd.f32 %v3075_v31, %v543_v34 }
  0xf3   : > { %v623_v36 = vmax.f32 %v549_v33, 0.0  ;;  %v2754_v33 = vld [vmem:[%s3563_s3 + $0x28] sm:$0xff]  }
  0xf4   : > { %v622_v37 = vmax.f32 %v544_v35, 0.0  ;;  %v2436_v38 = vpop.f32.mrb[2].mxu1  ;;  %2315 = vmatpush3.bf16.msra.mxu1 %v2754_v33 }
  0xf5   : > { %639 = vst.msk [vmem:[#allocation2 + $0x8] sm:$0xff] %vm385_vm1, %v623_v36  ;;  %v559_v39 = vadd.f32 %v2436_v38, %v3075_v31  ;;  %v553_v40 = vpop.f32.mrb[3].mxu1 }
  0xf6   : > { %638 = vst.msk [vmem:[#allocation2] sm:$0xff] %vm385_vm1, %v622_v37  ;;  %v554_v41 = vadd.f32 %v3075_v31, %v553_v40 }
  0xf7   : > { %v625_v42 = vmax.f32 %v559_v39, 0.0 }
  0xf8   : > { %v624_v43 = vmax.f32 %v554_v41, 0.0  ;;  %v2439_v44 = vpop.f32.mrb[4].mxu1 }
  0xf9   : > { %641 = vst.msk [vmem:[#allocation2 + $0x18] sm:$0xff] %vm385_vm1, %v625_v42  ;;  %v569_v45 = vadd.f32 %v2439_v44, %v3075_v31  ;;  %v563_v46 = vpop.f32.mrb[5].mxu1 }
  0xfa   : > { %640 = vst.msk [vmem:[#allocation2 + $0x10] sm:$0xff] %vm385_vm1, %v624_v43  ;;  %v564_v47 = vadd.f32 %v3075_v31, %v563_v46 }
  0xfb   : > { %v627_v48 = vmax.f32 %v569_v45, 0.0 }
  0xfc   : > { %v658_v49 = vld [vmem:[#allocation2 + $0x8] ss:$2 sm:$0xf]  ;;  %v660_v50 = vld [vmem:[#allocation2 + $0x9] ss:$2 sm:$0xf] }
  0xfd   : > { %v662_v51 = vmax.f32 %v658_v49, %v660_v50  ;;  %v654_v52 = vld [vmem:[#allocation2] ss:$2 sm:$0xf]  ;;  %v656_v53 = vld [vmem:[#allocation2 + $0x1] ss:$2 sm:$0xf] }
  0xfe   : > { %643 = vst.msk [vmem:[#allocation2 + $0x28] sm:$0xff] %vm385_vm1, %v627_v48  ;;  %v661_v54 = vmax.f32 %v654_v52, %v656_v53  ;;  %v626_v55 = vmax.f32 %v564_v47, 0.0  ;;  %v2442_v56 = vpop.f32.mrb[6].mxu1 }
  0xff   : > { %v579_v57 = vadd.f32 %v2442_v56, %v3075_v31  ;;  %v573_v58 = vpop.f32.mrb[7].mxu1 }
 0x100   : > { %v663_v59 = vmax.f32 %v661_v54, %v662_v51  ;;  %v670_v60 = vld [vmem:[#allocation2 + $0x18] ss:$2 sm:$0xf]  ;;  %v672_v61 = vld [vmem:[#allocation2 + $0x19] ss:$2 sm:$0xf]  ;;  %v574_v62 = vadd.f32 %v3075_v31, %v573_v58 }
 0x101   : > { %642 = vst.msk [vmem:[#allocation2 + $0x20] sm:$0xff] %vm385_vm1, %v626_v55  ;;  %v674_v63 = vmax.f32 %v670_v60, %v672_v61  ;;  %v666_v0 = vld [vmem:[#allocation2 + $0x10] ss:$2 sm:$0xf]  ;;  %v629_v3 = vmax.f32 %v579_v57, 0.0  ;;  %v2445_v5 = vpop.f32.mrb[8].mxu1 }
 0x102   : > { %v668_v1 = vld [vmem:[#allocation2 + $0x11] ss:$2 sm:$0xf]  ;;  %v628_v4 = vmax.f32 %v574_v62, 0.0  ;;  %664 = vst.msk [vmem:[#allocation3 + $0xf] sm:$0xf] %vm395_vm2, %v663_v59  ;;  %v589_v6 = vadd.f32 %v2445_v5, %v3075_v31 }
 0x103   : > { %v673_v2 = vmax.f32 %v666_v0, %v668_v1  ;;  %v583_v7 = vpop.f32.mrb[9].mxu1  ;;  %645 = vst.msk [vmem:[#allocation2 + $0x38] sm:$0xff] %vm385_vm1, %v629_v3  ;;  %v2755_v59 = vld [vmem:[%s3563_s3 + $0x70] sm:$0xff]  }
 0x104   : > { %644 = vst.msk [vmem:[#allocation2 + $0x30] sm:$0xff] %vm385_vm1, %v628_v4  ;;  %v584_v11 = vadd.f32 %v3075_v31, %v583_v7  ;;  %v631_v12 = vmax.f32 %v589_v6, 0.0  ;;  %v2448_v13 = vpop.f32.mrb[10].mxu1  ;;  %2316 = vmatprep.subr.bf16.mxu1 %v2755_v59 }
 0x105   : > { %v675_v8 = vmax.f32 %v673_v2, %v674_v63  ;;  %v682_v9 = vld [vmem:[#allocation2 + $0x28] ss:$2 sm:$0xf]  ;;  %v684_v10 = vld [vmem:[#allocation2 + $0x29] ss:$2 sm:$0xf]  ;;  %v599_v18 = vadd.f32 %v2448_v13, %v3075_v31 }
 0x106   : > { %v686_v16 = vmax.f32 %v682_v9, %v684_v10  ;;  %v630_v17 = vmax.f32 %v584_v11, 0.0  ;;  %v593_v20 = vpop.f32.mrb[11].mxu1  ;;  %647 = vst.msk [vmem:[#allocation2 + $0x48] sm:$0xff] %vm385_vm1, %v631_v12  ;;  %v2756_v11 = vld [vmem:[%s3563_s3 + $0x30] sm:$0xff]   ;;  %v2757_v12 = vld [vmem:[%s3563_s3 + $0x78] sm:$0xff]  }
 0x107   : > { %676 = vst.msk [vmem:[#allocation3 + $0x15] sm:$0xf] %vm395_vm2, %v675_v8  ;;  %v594_v23 = vadd.f32 %v3075_v31, %v593_v20  ;;  %v633_v25 = vmax.f32 %v599_v18, 0.0  ;;  %2317 = vmatpush3.bf16.msra.mxu1 %v2756_v11 }
 0x108   : > { %v678_v21 = vld [vmem:[#allocation2 + $0x20] ss:$2 sm:$0xf]  ;;  %v680_v22 = vld [vmem:[#allocation2 + $0x21] ss:$2 sm:$0xf]  ;;  %2318 = vmatprep.subr.bf16.mxu1 %v2757_v12 }
 0x109   : > { %v685_v24 = vmax.f32 %v678_v21, %v680_v22  ;;  %646 = vst.msk [vmem:[#allocation2 + $0x40] sm:$0xff] %vm385_vm1, %v630_v17  ;;  %v2451_v26 = vpop.f32.mrb[12].mxu1  ;;  %v632_v27 = vmax.f32 %v594_v23, 0.0  ;;  %649 = vst.msk [vmem:[#allocation2 + $0x58] sm:$0xff] %vm385_vm1, %v633_v25  ;;  %v761_v36 = vld [vmem:[#allocation3 + $0x9] sm:$0xff]  ;;  %v2758_v21 = vld [vmem:[%s3563_s3 + $0x38] sm:$0xff]  }
 0x10a   : > { %v609_v28 = vadd.f32 %v2451_v26, %v3075_v31  ;;  %v603_v29 = vpop.f32.mrb[13].mxu1  ;;  %v694_v34 = vld [vmem:[#allocation2 + $0x38] ss:$2 sm:$0xf]  ;;  %v755_v45 = vld [vmem:[#allocation3 + $0x8] sm:$0xff] }
 0x10b   : > { %v687_v30 = vmax.f32 %v685_v24, %v686_v16  ;;  %v604_v32 = vadd.f32 %v3075_v31, %v603_v29  ;;  %v696_v35 = vld [vmem:[#allocation2 + $0x39] ss:$2 sm:$0xf]  ;;  %648 = vst.msk [vmem:[#allocation2 + $0x50] sm:$0xff] %vm385_vm1, %v632_v27  ;;  %v767_v63 = vld [vmem:[#allocation3 + $0xd] sm:$0xff]  ;;  %2319 = vmatpush3.bf16.msra.mxu1 %v2758_v21 }
 0x10c   : > { %v698_v37 = vmax.f32 %v694_v34, %v696_v35  ;;  %v690_v38 = vld [vmem:[#allocation2 + $0x30] ss:$2 sm:$0xf]  ;;  %v692_v39 = vld [vmem:[#allocation2 + $0x31] ss:$2 sm:$0xf] }
 0x10d   : > { %688 = vst.msk [vmem:[#allocation3 + $0x1b] sm:$0xf] %vm395_vm2, %v687_v30  ;;  %v697_v40 = vmax.f32 %v690_v38, %v692_v39  ;;  %v635_v41 = vmax.f32 %v609_v28, 0.0  ;;  %v634_v42 = vmax.f32 %v604_v32, 0.0  ;;  %v2454_v43 = vpop.f32.mrb[14].mxu1 }
 0x10e   : > { %v762_v44 = vld [vmem:[#allocation3 + $0x11] sm:$0xff]  ;;  %v706_v47 = vld [vmem:[#allocation2 + $0x48] ss:$2 sm:$0xf]  ;;  %v619_v49 = vadd.f32 %v2454_v43, %v3075_v31  ;;  %v613_v58 = vpop.f32.mrb[15].mxu1 }
 0x10f   : > { %v756_v46 = vld [vmem:[#allocation3 + $0x10] sm:$0xff]  ;;  %v708_v48 = vld [vmem:[#allocation2 + $0x49] ss:$2 sm:$0xf]  ;;  %v2641_v50 = vpack.i.bf16 %v762_v44, %v761_v36  ;;  %v699_v52 = vmax.f32 %v697_v40, %v698_v37  ;;  %651 = vst.msk [vmem:[#allocation2 + $0x68] sm:$0xff] %vm385_vm1, %v635_v41  ;;  %650 = vst.msk [vmem:[#allocation2 + $0x60] sm:$0xff] %vm385_vm1, %v634_v42  ;;  %v614_v62 = vadd.f32 %v3075_v31, %v613_v58 }
 0x110   : > { %v2636_v51 = vpack.i.bf16 %v756_v46, %v755_v45  ;;  %v710_v53 = vmax.f32 %v706_v47, %v708_v48  ;;  %v702_v54 = vld [vmem:[#allocation2 + $0x40] ss:$2 sm:$0xf]  ;;  %v704_v55 = vld [vmem:[#allocation2 + $0x41] ss:$2 sm:$0xf] }
 0x111   : > { %v709_v56 = vmax.f32 %v702_v54, %v704_v55  ;;  %v637_v57 = vmax.f32 %v619_v49, 0.0  ;;  %2642 = vrot.lane.b32.xlu1 %v2641_v50, %s3572_s25  ;;  %v718_v60 = vld [vmem:[#allocation2 + $0x58] ss:$2 sm:$0xf]  ;;  %700 = vst.msk [vmem:[#allocation3 + $0x21] sm:$0xf] %vm395_vm2, %v699_v52 }
 0x112   : > { %2637 = vrot.lane.b32.xlu0 %v2636_v51, %s2878_s29  ;;  %v720_v61 = vld [vmem:[#allocation2 + $0x59] ss:$2 sm:$0xf]  ;;  %v714_v2 = vld [vmem:[#allocation2 + $0x50] ss:$2 sm:$0xf] }
 0x113   : > { %v711_v0 = vmax.f32 %v709_v56, %v710_v53  ;;  %v722_v1 = vmax.f32 %v718_v60, %v720_v61  ;;  %v716_v3 = vld [vmem:[#allocation2 + $0x51] ss:$2 sm:$0xf]  ;;  %653 = vst.msk [vmem:[#allocation2 + $0x78] sm:$0xff] %vm385_vm1, %v637_v57  ;;  %v636_v5 = vmax.f32 %v614_v62, 0.0  ;;  %v792_v62 = vld [vmem:[#allocation3 + $0x3d] sm:$0xff] }
 0x114   : > { %v721_v4 = vmax.f32 %v714_v2, %v716_v3  ;;  %v768_v6 = vld [vmem:[#allocation3 + $0x15] sm:$0xff] }
 0x115   : > { %v3136_v7 = vld [vmem:[#allocation3 + $0xf] sm:$0xff]  ;;  %v3138_v8 = vld [vmem:[#allocation3 + $0x17] sm:$0xff]  ;;  %712 = vst.msk [vmem:[#allocation3 + $0x27] sm:$0xf] %vm395_vm2, %v711_v0  ;;  %v2651_v31 = vpack.i.bf16 %v768_v6, %v767_v63 }
 0x116   : > { %v2646_v9 = vpack.i.bf16 %v3138_v8, %v3136_v7  ;;  %v723_v10 = vmax.f32 %v721_v4, %v722_v1  ;;  %652 = vst.msk [vmem:[#allocation2 + $0x70] sm:$0xff] %vm385_vm1, %v636_v5  ;;  %v730_v13 = vld [vmem:[#allocation2 + $0x68] ss:$2 sm:$0xf]  ;;  %v780_v15 = vld [vmem:[#allocation3 + $0x13] sm:$0xff] }
 0x117   : > { %v732_v14 = vld [vmem:[#allocation2 + $0x69] ss:$2 sm:$0xf]  ;;  %2652 = vrot.lane.b32.xlu1 %v2651_v31, %s2879_s22  ;;  %v786_v16 = vld [vmem:[#allocation3 + $0x14] sm:$0xff] }
 0x118   : > { %2647 = vrot.lane.b32.xlu0 %v2646_v9, %s2878_s29  ;;  %v734_v17 = vmax.f32 %v730_v13, %v732_v14  ;;  %v726_v18 = vld [vmem:[#allocation2 + $0x60] ss:$2 sm:$0xf]  ;;  %v728_v20 = vld [vmem:[#allocation2 + $0x61] ss:$2 sm:$0xf] }
 0x119   : > { %724 = vst.msk [vmem:[#allocation3 + $0x2d] sm:$0xf] %vm395_vm2, %v723_v10  ;;  %v733_v22 = vmax.f32 %v726_v18, %v728_v20  ;;  %v769_v23 = vld [vmem:[#allocation3 + $0x1d] sm:$0xff] }
 0x11a   : > { %v781_v24 = vld [vmem:[#allocation3 + $0x1b] sm:$0xff]  ;;  %v976_v28 = vpack.c.bf16 %v769_v23, %v768_v6 }
 0x11b   : > { %v787_v25 = vld [vmem:[#allocation3 + $0x1c] sm:$0xff]  ;;  %v2656_v29 = vpack.i.bf16 %v781_v24, %v780_v15  ;;  %v735_v32 = vmax.f32 %v733_v22, %v734_v17  ;;  %v749_v17 = vld [vmem:[#allocation3 + $0x7] sm:$0xff] }
 0x11c   : > { %v742_v26 = vld [vmem:[#allocation2 + $0x78] ss:$2 sm:$0xf]  ;;  %v744_v27 = vld [vmem:[#allocation2 + $0x79] ss:$2 sm:$0xf]  ;;  %v2661_v30 = vpack.i.bf16 %v787_v25, %v786_v16  ;;  %2460 = vmatmul.mubr.msk.bf16.vlgmr.msra.gmra.mrb[0].mxu0 %vm385_vm1, %v976_v28 }
 0x11d   : > { %v746_v33 = vmax.f32 %v742_v26, %v744_v27  ;;  %2657 = vrot.lane.b32.xlu1 %v2656_v29, %s3572_s25  ;;  %v757_v34 = vld [vmem:[#allocation3 + $0x18] sm:$0xff]  ;;  %v758_v35 = vld [vmem:[#allocation3 + $0x20] sm:$0xff]  ;;  %v738_v36 = vld [vmem:[#allocation2 + $0x70] ss:$2 sm:$0xf]  ;;  %2463 = vmatprep.mubr.msk.bf16.mxu0 %vm2876_vm3, %v2875_v19 }
 0x11e   : > { %v740_v37 = vld [vmem:[#allocation2 + $0x71] ss:$2 sm:$0xf]  ;;  %736 = vst.msk [vmem:[#allocation3 + $0x33] sm:$0xf] %vm395_vm2, %v735_v32  ;;  %2662 = vrot.lane.b32.xlu0 %v2661_v30, %s2879_s22  ;;  %v2666_v38 = vpack.i.bf16 %v758_v35, %v757_v34  ;;  %v764_v40 = vld [vmem:[#allocation3 + $0x21] sm:$0xff] }
 0x11f   : > { %v745_v39 = vmax.f32 %v738_v36, %v740_v37  ;;  %v3162_v41 = vld [vmem:[#allocation3 + $0x1f] sm:$0xff]  ;;  %v774_v34 = vld [vmem:[#allocation3 + $0x16] sm:$0xff] }
 0x120   : > { %v3164_v42 = vld [vmem:[#allocation3 + $0x27] sm:$0xff]  ;;  %v763_v45 = vld [vmem:[#allocation3 + $0x19] sm:$0xff] }
 0x121   : > { %v747_v43 = vmax.f32 %v745_v39, %v746_v33  ;;  %2667 = vrot.lane.b32.xlu1 %v2666_v38, %s2878_s29  ;;  %v2681_v44 = vpack.i.bf16 %v3164_v42, %v3162_v41  ;;  %v783_v46 = vld [vmem:[#allocation3 + $0x2b] sm:$0xff]  ;;  %v2671_v47 = vpack.i.bf16 %v764_v40, %v763_v45  ;;  %v782_v49 = vld [vmem:[#allocation3 + $0x23] sm:$0xff] }
 0x122   : > { %v770_v48 = vld [vmem:[#allocation3 + $0x25] sm:$0xff]  ;;  %v2686_v51 = vpack.i.bf16 %v783_v46, %v782_v49  ;;  %v773_v33 = vld [vmem:[#allocation3 + $0xe] sm:$0xff] }
 0x123   : > { %748 = vst.msk [vmem:[#allocation3 + $0x39] sm:$0xf] %vm395_vm2, %v747_v43  ;;  %2682 = vrot.lane.b32.xlu0 %v2681_v44, %s2878_s29  ;;  %v2676_v54 = vpack.i.bf16 %v770_v48, %v769_v23  ;;  %v788_v56 = vld [vmem:[#allocation3 + $0x24] sm:$0xff] }
 0x124   : > { %v759_v58 = vld [vmem:[#allocation3 + $0x28] sm:$0xff] }
 0x125   : > { %2672 = vrot.lane.b32.xlu1 %v2671_v47, %s3572_s25  ;;  %v771_v50 = vld [vmem:[#allocation3 + $0x2d] sm:$0xff] }
 0x126   : > { %v979_v52 = vpack.c.bf16 %v771_v50, %v770_v48  ;;  %v789_v53 = vld [vmem:[#allocation3 + $0x2c] sm:$0xff] }
 0x127   : > { %2687 = vrot.lane.b32.xlu0 %v2686_v51, %s3572_s25  ;;  %v760_v55 = vld [vmem:[#allocation3 + $0x30] sm:$0xff]  ;;  %v2691_v57 = vpack.i.bf16 %v789_v53, %v788_v56 }
 0x128   : > { %2464 = vmatmul.mubr.msk.bf16.gmra.mrb[4].mxu0 %vm385_vm1, %v979_v52  ;;  %v2696_v60 = vpack.i.bf16 %v760_v55, %v759_v58  ;;  %v766_v63 = vld [vmem:[#allocation3 + $0x31] sm:$0xff]  ;;  %v765_v3 = vld [vmem:[#allocation3 + $0x29] sm:$0xff] }
 0x129   : > { %2677 = vrot.lane.b32.xlu1 %v2676_v54, %s2879_s22  ;;  %2467 = vmatprep.mubr.msk.bf16.mxu0 %vm2876_vm3, %v2875_v19  ;;  %v3178_v0 = vld [vmem:[#allocation3 + $0x2f] sm:$0xff]  ;;  %v2701_v6 = vpack.i.bf16 %v766_v63, %v765_v3 }
 0x12a   : > { %v779_v59 = vld [vmem:[#allocation3 + $0x37] sm:$0xff] }
 0x12b   : > { %2692 = vrot.lane.b32.xlu0 %v2691_v57, %s2879_s22  ;;  %v772_v61 = vld [vmem:[#allocation3 + $0x35] sm:$0xff]  ;;  %v2706_v1 = vpack.i.bf16 %v779_v59, %v3178_v0 }
 0x12c   : > { %v982_v2 = vpack.c.bf16 %v792_v62, %v772_v61  ;;  %v784_v4 = vld [vmem:[#allocation3 + $0x33] sm:$0xff]  ;;  %v785_v5 = vld [vmem:[#allocation3 + $0x3b] sm:$0xff]  ;;  %v2721_v11 = vpack.i.bf16 %v772_v61, %v771_v50 }
 0x12d   : > { %2697 = vrot.lane.b32.xlu1 %v2696_v60, %s2878_s29  ;;  %v2711_v31 = vpack.i.bf16 %v785_v5, %v784_v4  ;;  %v790_v9 = vld [vmem:[#allocation3 + $0x34] sm:$0xff]  ;;  %v791_v10 = vld [vmem:[#allocation3 + $0x3c] sm:$0xff] }
 0x12e   : > { %v2716_v12 = vpack.i.bf16 %v791_v10, %v790_v9 }
 0x12f   : > { %2707 = vrot.lane.b32.xlu0 %v2706_v1, %s2878_s29  ;;  %v775_v1 = vld [vmem:[#allocation3 + $0x1e] sm:$0xff]  ;;  %s3578_s29 = smov 64  }
 0x130   : > { %2468 = vmatmul.mubr.msk.bf16.gmra.mrb[8].mxu0 %vm385_vm1, %v982_v2  ;;  %v776_v2 = vld [vmem:[#allocation3 + $0x26] sm:$0xff] }
 0x131   : > { %2702 = vrot.lane.b32.xlu1 %v2701_v6, %s3572_s25 }
 0x133   : > { %2712 = vrot.lane.b32.xlu0 %v2711_v31, %s3572_s25 }
 0x135   : > { %2722 = vrot.lane.b32.xlu1 %v2721_v11, %s2879_s22 }
 0x137   : > { %2717 = vrot.lane.b32.xlu0 %v2716_v12, %s2879_s22 }
 0x183   : > { %v2643_v13 = vpop.permute.xlu1 %2642 }
 0x184   : > { %v2638_v14 = vpop.permute.xlu0 %2637  ;;  %v2645_v21 = vunpack.i.h.bf16 %v2643_v13  ;;  %v2644_v22 = vunpack.i.l.bf16 %v2643_v13 }
 0x185   : > { %v2640_v15 = vunpack.i.h.bf16 %v2638_v14  ;;  %v2639_v16 = vunpack.i.l.bf16 %v2638_v14 }
 0x187   : > { %v937_v23 = vsel %vm385_vm1, %v749_v17, %v2639_v16  ;;  %v938_v24 = vsel %vm385_vm1, %v3136_v7, %v2640_v15 }
 0x188   : > { %v943_v30 = vsel %vm397_vm4, %v937_v23, %v2644_v22  ;;  %v944_v32 = vsel %vm397_vm4, %v938_v24, %v2645_v21 }
 0x189   : > { %v2653_v18 = vpop.permute.xlu1 %2652 }
 0x18a   : > { %v2648_v20 = vpop.permute.xlu0 %2647  ;;  %v2655_v27 = vunpack.i.h.bf16 %v2653_v18  ;;  %v2654_v28 = vunpack.i.l.bf16 %v2653_v18 }
 0x18b   : > { %v2650_v25 = vunpack.i.h.bf16 %v2648_v20  ;;  %v2649_v26 = vunpack.i.l.bf16 %v2648_v20 }
 0x18c   : > { %v950_v43 = vsel %vm949_vm5, %v943_v30, %v2654_v28  ;;  %v951_v44 = vsel %vm949_vm5, %v944_v32, %v2655_v27 }
 0x18d   : > { %v957_v38 = vsel %vm385_vm1, %v774_v34, %v2650_v25  ;;  %v956_v39 = vsel %vm385_vm1, %v773_v33, %v2649_v26  ;;  %v974_v51 = vpack.c.bf16 %v951_v44, %v950_v43 }
 0x18f   : > { %v2658_v29 = vpop.permute.xlu1 %2657 }
 0x190   : > { %v2660_v35 = vunpack.i.h.bf16 %v2658_v29  ;;  %v2659_v36 = vunpack.i.l.bf16 %v2658_v29  ;;  %v2663_v37 = vpop.permute.xlu0 %2662 }
 0x191   : > { %v2665_v7 = vunpack.i.h.bf16 %v2663_v37  ;;  %v2664_v40 = vunpack.i.l.bf16 %v2663_v37  ;;  %v778_v37 = vld [vmem:[#allocation3 + $0x36] sm:$0xff] }
 0x192   : > { %v962_v45 = vsel %vm397_vm4, %v956_v39, %v2659_v36  ;;  %v963_v46 = vsel %vm397_vm4, %v957_v38, %v2660_v35  ;;  %v777_v36 = vld [vmem:[#allocation3 + $0x2e] sm:$0xff] }
 0x193   : > { %v2668_v47 = vpop.permute.xlu1 %2667  ;;  %v968_v48 = vsel %vm949_vm5, %v962_v45, %v2664_v40  ;;  %v969_v49 = vsel %vm949_vm5, %v963_v46, %v2665_v7 }
 0x194   : > { %v975_v50 = vpack.c.bf16 %v969_v49, %v968_v48  ;;  %v2670_v54 = vunpack.i.h.bf16 %v2668_v47  ;;  %v2669_v55 = vunpack.i.l.bf16 %v2668_v47 }
 0x195   : > { %v2683_v52 = vpop.permute.xlu0 %2682 }
 0x196   : > { %1175 = vmatprep.mubr.bf16.mxu1 %v975_v50  ;;  %v2685_v56 = vunpack.i.h.bf16 %v2683_v52  ;;  %v2684_v57 = vunpack.i.l.bf16 %v2683_v52  ;;  %v940_v5 = vsel %vm385_vm1, %v3162_v41, %v2670_v54  ;;  %v939_v6 = vsel %vm385_vm1, %v3138_v8, %v2669_v55 }
 0x197   : > { %v2673_v53 = vpop.permute.xlu1 %2672  ;;  %1176 = vmatmul.mubr.bf16.vlgmr.msra.gmra.mrb[16].mxu1 %v974_v51 }
 0x198   : > { %v2675_v59 = vunpack.i.h.bf16 %v2673_v53  ;;  %v2674_v60 = vunpack.i.l.bf16 %v2673_v53  ;;  %v959_v31 = vsel %vm385_vm1, %v776_v2, %v2685_v56  ;;  %v958_v9 = vsel %vm385_vm1, %v775_v1, %v2684_v57 }
 0x199   : > { %v2688_v58 = vpop.permute.xlu0 %2687 }
 0x19a   : > { %v2690_v62 = vunpack.i.h.bf16 %v2688_v58  ;;  %v2689_v63 = vunpack.i.l.bf16 %v2688_v58  ;;  %v945_v11 = vsel %vm397_vm4, %v939_v6, %v2674_v60  ;;  %v946_v12 = vsel %vm397_vm4, %v940_v5, %v2675_v59  ;;  %v2759_v5 = vld [vmem:[%s3565_s5 + $0x40] sm:$0xff]  }
 0x19b   : > { %v2678_v61 = vpop.permute.xlu1 %2677  ;;  %v2760_v6 = vld [vmem:[%s3565_s5] sm:$0xff]   ;;  %2343 = vmatprep.subr.bf16.mxu1 %v2759_v5 }
 0x19c   : > { %v2680_v3 = vunpack.i.h.bf16 %v2678_v61  ;;  %v2679_v4 = vunpack.i.l.bf16 %v2678_v61  ;;  %v964_v15 = vsel %vm397_vm4, %v958_v9, %v2689_v63  ;;  %v965_v16 = vsel %vm397_vm4, %v959_v31, %v2690_v62  ;;  %v2761_v31 = vld [vmem:[%s3565_s5 + $0x48] sm:$0xff]   ;;  %v2763_v9 = vld [vmem:[%s3565_s5 + $0xc0] sm:$0xff]   ;;  %2344 = vmatpush3.bf16.msra.mxu1 %v2760_v6 }
 0x19d   : > { %v2693_v10 = vpop.permute.xlu0 %2692  ;;  %2365 = vmatprep.subr.bf16.mxu0 %v2763_v9  ;;  %2345 = vmatprep.subr.bf16.mxu1 %v2761_v31 }
 0x19e   : > { %v2695_v13 = vunpack.i.h.bf16 %v2693_v10  ;;  %v2694_v14 = vunpack.i.l.bf16 %v2693_v10  ;;  %v952_v41 = vsel %vm949_vm5, %v945_v11, %v2679_v4  ;;  %v953_v8 = vsel %vm949_vm5, %v946_v12, %v2680_v3  ;;  %v2764_v10 = vld [vmem:[%s3565_s5 + $0x80] sm:$0xff]   ;;  %v2767_v11 = vld [vmem:[%s3565_s5 + $0xc8] sm:$0xff]  }
 0x19f   : > { %v2698_v17 = vpop.permute.xlu1 %2697  ;;  %v977_v23 = vpack.c.bf16 %v953_v8, %v952_v41  ;;  %v2762_v12 = vld [vmem:[%s3565_s5 + $0x8] sm:$0xff]   ;;  %2366 = vmatpush3.bf16.msra.mxu0 %v2764_v10  ;;  %v2772_v41 = vld [vmem:[%s3565_s5 + $0x90] sm:$0xff]   ;;  %v2775_v8 = vld [vmem:[%s3565_s5 + $0xd8] sm:$0xff]  }
 0x1a0   : > { %v970_v18 = vsel %vm949_vm5, %v964_v15, %v2694_v14  ;;  %v971_v20 = vsel %vm949_vm5, %v965_v16, %v2695_v13  ;;  %v2700_v25 = vunpack.i.h.bf16 %v2698_v17  ;;  %v2699_v26 = vunpack.i.l.bf16 %v2698_v17  ;;  %v2765_v13 = vld [vmem:[%s3565_s5 + $0x50] sm:$0xff]   ;;  %v2768_v14 = vld [vmem:[%s3565_s5 + $0x88] sm:$0xff]   ;;  %2367 = vmatprep.subr.bf16.mxu0 %v2767_v11  ;;  %2346 = vmatpush3.bf16.msra.mxu1 %v2762_v12  ;;  %v2769_v17 = vld [vmem:[%s3565_s5 + $0x58] sm:$0xff]  }
 0x1a1   : > { %v2708_v21 = vpop.permute.xlu0 %2707  ;;  %v978_v22 = vpack.c.bf16 %v971_v20, %v970_v18  ;;  %v2771_v15 = vld [vmem:[%s3565_s5 + $0xd0] sm:$0xff]   ;;  %2347 = vmatprep.subr.bf16.mxu1 %v2765_v13  ;;  %v2770_v18 = vld [vmem:[%s3565_s5 + $0x18] sm:$0xff]   ;;  %v2773_v20 = vld [vmem:[%s3565_s5 + $0x60] sm:$0xff]  }
 0x1a2   : > { %v2710_v27 = vunpack.i.h.bf16 %v2708_v21  ;;  %v2709_v28 = vunpack.i.l.bf16 %v2708_v21  ;;  %v942_v7 = vsel %vm385_vm1, %v3178_v0, %v2700_v25  ;;  %v941_v40 = vsel %vm385_vm1, %v3164_v42, %v2699_v26  ;;  %v2766_v16 = vld [vmem:[%s3565_s5 + $0x10] sm:$0xff]   ;;  %v2776_v21 = vld [vmem:[%s3565_s5 + $0x98] sm:$0xff]   ;;  %v2780_v25 = vld [vmem:[%s3565_s5 + $0xa0] sm:$0xff]  }
 0x1a3   : > { %v2703_v24 = vpop.permute.xlu1 %2702  ;;  %1183 = vmatprep.mubr.bf16.mxu1 %v978_v22  ;;  %2368 = vmatpush3.bf16.msra.mxu0 %v2768_v14  ;;  %v2779_v22 = vld [vmem:[%s3565_s5 + $0xe0] sm:$0xff]   ;;  %v2778_v26 = vld [vmem:[%s3565_s5 + $0x28] sm:$0xff]  }
 0x1a4   : > { %1184 = vmatmul.mubr.bf16.gmra.mrb[20].mxu1 %v977_v23  ;;  %v2705_v30 = vunpack.i.h.bf16 %v2703_v24  ;;  %v2704_v32 = vunpack.i.l.bf16 %v2703_v24  ;;  %v961_v43 = vsel %vm385_vm1, %v778_v37, %v2710_v27  ;;  %v960_v44 = vsel %vm385_vm1, %v777_v36, %v2709_v28  ;;  %2369 = vmatprep.subr.bf16.mxu0 %v2771_v15  ;;  %v2774_v23 = vld [vmem:[%s3565_s5 + $0x20] sm:$0xff]   ;;  %v2777_v24 = vld [vmem:[%s3565_s5 + $0x68] sm:$0xff]   ;;  %v2781_v27 = vld [vmem:[%s3565_s5 + $0x70] sm:$0xff]  }
 0x1a5   : > { %v2713_v29 = vpop.permute.xlu0 %2712  ;;  %2348 = vmatpush3.bf16.msra.mxu1 %v2766_v16 }
 0x1a6   : > { %v2715_v34 = vunpack.i.h.bf16 %v2713_v29  ;;  %v2714_v35 = vunpack.i.l.bf16 %v2713_v29  ;;  %v947_v46 = vsel %vm397_vm4, %v941_v40, %v2704_v32  ;;  %v948_v47 = vsel %vm397_vm4, %v942_v7, %v2705_v30  ;;  %2349 = vmatprep.subr.bf16.mxu1 %v2769_v17  ;;  %v2206_v29 = vld [vmem:[%s3564_s4] ss:$0 sm:$0xff] }
 0x1a7   : > { %v2723_v33 = vpop.permute.xlu1 %2722  ;;  %2370 = vmatpush3.bf16.msra.mxu0 %v2772_v41 }
 0x1a8   : > { %v2725_v38 = vunpack.i.h.bf16 %v2723_v33  ;;  %v2724_v39 = vunpack.i.l.bf16 %v2723_v33  ;;  %v966_v50 = vsel %vm397_vm4, %v960_v44, %v2714_v35  ;;  %v967_v51 = vsel %vm397_vm4, %v961_v43, %v2715_v34  ;;  %2371 = vmatprep.subr.bf16.mxu0 %v2775_v8 }
 0x1a9   : > { %v2718_v45 = vpop.permute.xlu0 %2717  ;;  %2350 = vmatpush3.bf16.msra.mxu1 %v2770_v18 }
 0x1aa   : > { %v2720_v48 = vunpack.i.h.bf16 %v2718_v45  ;;  %v2719_v49 = vunpack.i.l.bf16 %v2718_v45  ;;  %v954_v0 = vsel %vm949_vm5, %v947_v46, %v2724_v39  ;;  %v955_v52 = vsel %vm949_vm5, %v948_v47, %v2725_v38  ;;  %2351 = vmatprep.subr.bf16.mxu1 %v2773_v20 }
 0x1ab   : > { %v980_v55 = vpack.c.bf16 %v955_v52, %v954_v0  ;;  %2372 = vmatpush3.bf16.msra.mxu0 %v2776_v21 }
 0x1ac   : > { %v972_v42 = vsel %vm949_vm5, %v966_v50, %v2719_v49  ;;  %v973_v53 = vsel %vm949_vm5, %v967_v51, %v2720_v48  ;;  %2373 = vmatprep.subr.bf16.mxu0 %v2779_v22 }
 0x1ad   : > { %v981_v54 = vpack.c.bf16 %v973_v53, %v972_v42  ;;  %2352 = vmatpush3.bf16.msra.mxu1 %v2774_v23 }
 0x1ae   : > { %2353 = vmatprep.subr.bf16.mxu1 %v2777_v24 }
 0x1af   : > { %1191 = vmatprep.mubr.bf16.mxu1 %v981_v54  ;;  %2374 = vmatpush3.bf16.msra.mxu0 %v2780_v25 }
 0x1b0   : > { %1192 = vmatmul.mubr.bf16.gmra.mrb[24].mxu1 %v980_v55 }
 0x1b1   : > { %2354 = vmatpush3.bf16.msra.mxu1 %v2778_v26 }
 0x1b2   : > { %2355 = vmatprep.subr.bf16.mxu1 %v2781_v27 }
 0x1ef   : > { %v3229_v56 = vpop.f32.mrb[0].mxu0 }
 0x1f0   : > { %v2461_v57 = vpop.f32.mrb[1].mxu0 }
 0x1f1   : > { %v3231_v58 = vpop.f32.mrb[2].mxu0 }
 0x1f2   : > { %v2462_v59 = vpop.f32.mrb[3].mxu0 }
 0x1fb   : > { %v3233_v60 = vpop.f32.mrb[4].mxu0 }
 0x1fc   : > { %v2465_v61 = vpop.f32.mrb[5].mxu0 }
 0x1fd   : > { %v3235_v62 = vpop.f32.mrb[6].mxu0 }
 0x1fe   : > { %v2466_v63 = vpop.f32.mrb[7].mxu0 }
 0x203   : > { %v3237_v1 = vpop.f32.mrb[8].mxu0 }
 0x204   : > { %v2469_v2 = vpop.f32.mrb[9].mxu0 }
 0x205   : > { %v3239_v3 = vpop.f32.mrb[10].mxu0 }
 0x206   : > { %v2470_v4 = vpop.f32.mrb[11].mxu0 }
 0x26a   : > { %v2320_v28 = vpop.f32.mrb[16].mxu1 }
 0x26b   : > { %v2321_v30 = vpop.f32.mrb[17].mxu1 }
 0x26c   : > { %v2322_v32 = vadd.f32 %v2321_v30, %v2320_v28  ;;  %v2323_v33 = vpop.f32.mrb[18].mxu1  ;;  %v2783_v30 = vld [vmem:[%s3565_s5 + $0xe8] sm:$0xff]  }
 0x26d   : > { %v2324_v34 = vpop.f32.mrb[19].mxu1  ;;  %2375 = vmatprep.subr.bf16.mxu0 %v2783_v30  ;;  %v2028_v30 = vld [vmem:[%s3569_s9 + $0x10] sm:$0xff] }
 0x26e   : > { %v1178_v35 = vadd.f32 %v2322_v32, %v2206_v29  ;;  %v2325_v36 = vadd.f32 %v2324_v34, %v2323_v33  ;;  %v2784_v32 = vld [vmem:[%s3565_s5 + $0xa8] sm:$0xff]   ;;  %v2785_v33 = vld [vmem:[%s3565_s5 + $0x78] sm:$0xff]  }
 0x26f   : > { %2376 = vmatpush3.bf16.msra.mxu0 %v2784_v32  ;;  %v2880_v32 = vmov 0.0|0.0  }
 0x270   : > { %v1235_v37 = vadd.f32 %v3229_v56, %v1178_v35  ;;  %v1181_v38 = vadd.f32 %v2325_v36, %v2206_v29  ;;  %v2786_v35 = vld [vmem:[%s3565_s5 + $0x38] sm:$0xff]   ;;  %v2787_v36 = vld [vmem:[%s3565_s5 + $0xf0] sm:$0xff]  }
 0x271   : > { %2377 = vmatprep.subr.bf16.mxu0 %v2787_v36  ;;  %v2030_v36 = vld [vmem:[%s3569_s9 + $0x20] sm:$0xff] }
 0x272   : > { %v1257_v39 = vmax.f32 %v1235_v37, 0.0  ;;  %v1238_v7 = vadd.f32 %v3231_v58, %v1181_v38  ;;  %v2788_v37 = vld [vmem:[%s3565_s5 + $0xb0] sm:$0xff]  }
 0x273   : > { %2378 = vmatpush3.bf16.msra.mxu0 %v2788_v37  ;;  %v2031_v37 = vld [vmem:[%s3569_s9 + $0x28] sm:$0xff] }
 0x274   : > { %1263 = vst.msk [vmem:[#allocation4] sm:$0xff] %vm397_vm4, %v1257_v39  ;;  %v1258_v40 = vmax.f32 %v1238_v7, 0.0 }
 0x276   : > { %1264 = vst.msk [vmem:[#allocation4 + $0x8] sm:$0xff] %vm397_vm4, %v1258_v40  ;;  %v2789_v40 = vld [vmem:[%s3565_s5 + $0xf8] sm:$0xff]  }
 0x277   : > { %v2326_v43 = vpop.f32.mrb[20].mxu1  ;;  %2379 = vmatprep.subr.bf16.mxu0 %v2789_v40 }
 0x278   : > { %v2327_v44 = vpop.f32.mrb[21].mxu1 }
 0x279   : > { %v2328_v45 = vadd.f32 %v2327_v44, %v2326_v43  ;;  %v2329_v46 = vpop.f32.mrb[22].mxu1  ;;  %v2791_v43 = vld [vmem:[%s3565_s5 + $0xb8] sm:$0xff]  }
 0x27a   : > { %v2330_v47 = vpop.f32.mrb[23].mxu1  ;;  %2380 = vmatpush3.bf16.msra.mxu0 %v2791_v43  ;;  %v2034_v43 = vld [vmem:[%s3569_s9 + $0x40] sm:$0xff] }
 0x27b   : > { %v1270_v48 = vld [vmem:[#allocation4 + $0x1] ss:$2 sm:$0x3]  ;;  %v1272_v49 = vld [vmem:[#allocation4 + $0x2] ss:$2 sm:$0x3]  ;;  %v1186_v50 = vadd.f32 %v2328_v45, %v2206_v29  ;;  %v2331_v51 = vadd.f32 %v2330_v47, %v2329_v46  ;;  %2483 = vmatprep.subr.bf16.mxu0 %v2875_v19 }
 0x27c   : > { %v1277_v54 = vmax.f32 %v1270_v48, %v1272_v49 }
 0x27d   : > { %v1274_v0 = vld [vmem:[#allocation4 + $0x7] ss:$2 sm:$0x3]  ;;  %v1276_v52 = vld [vmem:[#allocation4 + $0x8] ss:$2 sm:$0x3]  ;;  %v1243_v42 = vadd.f32 %v3233_v60, %v1186_v50  ;;  %v1189_v53 = vadd.f32 %v2331_v51, %v2206_v29 }
 0x27e   : > { %v1278_v55 = vmax.f32 %v1274_v0, %v1276_v52  ;;  %v1283_v5 = vld [vmem:[#allocation4 + $0xd] ss:$2 sm:$0x3] }
 0x27f   : > { %v1259_v56 = vmax.f32 %v1243_v42, 0.0  ;;  %v1246_v57 = vadd.f32 %v3235_v62, %v1189_v53 }
 0x280   : > { %v1279_v58 = vmax.f32 %v1277_v54, %v1278_v55 }
 0x281   : > { %1265 = vst.msk [vmem:[#allocation4 + $0x10] sm:$0xff] %vm397_vm4, %v1259_v56  ;;  %v1260_v59 = vmax.f32 %v1246_v57, 0.0 }
 0x282   : > { %1281 = vst.msk [vmem:[#allocation5 + $0xd] sm:$0x3] %vm1280_vm6, %v1279_v58 }
 0x283   : > { %1266 = vst.msk [vmem:[#allocation4 + $0x18] sm:$0xff] %vm397_vm4, %v1260_v59  ;;  %v2332_v61 = vpop.f32.mrb[24].mxu1 }
 0x284   : > { %v2333_v63 = vpop.f32.mrb[25].mxu1 }
 0x285   : > { %v2334_v2 = vadd.f32 %v2333_v63, %v2332_v61  ;;  %v2335_v4 = vpop.f32.mrb[26].mxu1 }
 0x286   : > { %v2336_v60 = vpop.f32.mrb[27].mxu1 }
 0x287   : > { %v1194_v6 = vadd.f32 %v2334_v2, %v2206_v29  ;;  %v2337_v31 = vadd.f32 %v2336_v60, %v2335_v4 }
 0x288   : > { %v1285_v9 = vld [vmem:[#allocation4 + $0xe] ss:$2 sm:$0x3]  ;;  %v1287_v10 = vld [vmem:[#allocation4 + $0x13] ss:$2 sm:$0x3] }
 0x289   : > { %v1289_v62 = vld [vmem:[#allocation4 + $0x14] ss:$2 sm:$0x3]  ;;  %v1290_v11 = vmax.f32 %v1283_v5, %v1285_v9  ;;  %v1251_v12 = vadd.f32 %v3237_v1, %v1194_v6  ;;  %v1197_v13 = vadd.f32 %v2337_v31, %v2206_v29  ;;  %v2782_v29 = vld [vmem:[%s3565_s5 + $0x30] sm:$0xff]   ;;  %v1320_v38 = vld [vmem:[#allocation5 + $0x8] sm:$0xff] }
 0x28a   : > { %v1291_v14 = vmax.f32 %v1287_v10, %v1289_v62  ;;  %v1295_v8 = vld [vmem:[#allocation4 + $0x19] ss:$2 sm:$0x3]  ;;  %v1297_v18 = vld [vmem:[#allocation4 + $0x1a] ss:$2 sm:$0x3]  ;;  %2356 = vmatpush3.bf16.msra.mxu1 %v2782_v29 }
 0x28b   : > { %v1261_v15 = vmax.f32 %v1251_v12, 0.0  ;;  %v1254_v16 = vadd.f32 %v3239_v3, %v1197_v13  ;;  %v1302_v22 = vmax.f32 %v1295_v8, %v1297_v18  ;;  %2357 = vmatprep.subr.bf16.mxu1 %v2785_v33  ;;  %v1318_v54 = vld [vmem:[#allocation5 + $0x7] sm:$0xff]  ;;  %v2793_v8 = vld [vmem:[%s3565_s5 + $0x110] sm:$0xff]   ;;  %v2794_v18 = vld [vmem:[%s3565_s5 + $0x118] sm:$0xff]  }
 0x28c   : > { %v1292_v17 = vmax.f32 %v1290_v11, %v1291_v14  ;;  %v1322_v59 = vld [vmem:[#allocation5 + $0x9] sm:$0xff]  ;;  %v2790_v6 = vld [vmem:[%s3565_s5 + $0x100] sm:$0xff]  }
 0x28d   : > { %1267 = vst.msk [vmem:[#allocation4 + $0x20] sm:$0xff] %vm397_vm4, %v1261_v15  ;;  %v1262_v41 = vmax.f32 %v1254_v16, 0.0  ;;  %v2027_v29 = vld [vmem:[%s3569_s9 + $0x8] sm:$0xff] }
 0x28e   : > { %1293 = vst.msk [vmem:[#allocation5 + $0x11] sm:$0x3] %vm1280_vm6, %v1292_v17  ;;  %2358 = vmatpush3.bf16.msra.mxu1 %v2786_v35 }
 0x28f   : > { %1268 = vst.msk [vmem:[#allocation4 + $0x28] sm:$0xff] %vm397_vm4, %v1262_v41  ;;  %2471 = vmatprep.subr.bf16.mxu1 %v2875_v19  ;;  %v2792_v41 = vld [vmem:[%s3565_s5 + $0x108] sm:$0xff]  }
 0x294   : > { %v1299_v20 = vld [vmem:[#allocation4 + $0x1f] ss:$2 sm:$0x3]  ;;  %v1301_v21 = vld [vmem:[#allocation4 + $0x20] ss:$2 sm:$0x3] }
 0x295   : > { %v1303_v23 = vmax.f32 %v1299_v20, %v1301_v21  ;;  %v1307_v1 = vld [vmem:[#allocation4 + $0x25] ss:$2 sm:$0x3]  ;;  %v1324_v44 = vld [vmem:[#allocation5 + $0xb] sm:$0xff] }
 0x296   : > { %v1309_v24 = vld [vmem:[#allocation4 + $0x26] ss:$2 sm:$0x3]  ;;  %v1311_v25 = vld [vmem:[#allocation4 + $0x2b] ss:$2 sm:$0x3] }
 0x297   : > { %v1313_v26 = vld [vmem:[#allocation4 + $0x2c] ss:$2 sm:$0x3]  ;;  %v1314_v27 = vmax.f32 %v1307_v1, %v1309_v24  ;;  %v1304_v3 = vmax.f32 %v1302_v22, %v1303_v23  ;;  %v1328_v49 = vld [vmem:[#allocation5 + $0xd] sm:$0xff]  ;;  %v2795_v22 = vld [vmem:[%s3567_s7] sm:$0xff]  }
 0x298   : > { %v1315_v28 = vmax.f32 %v1311_v25, %v1313_v26  ;;  %v1326_v11 = vld [vmem:[#allocation5 + $0xc] sm:$0xff]  ;;  %v2798_v24 = vld [vmem:[%s3567_s7 + $0x18] sm:$0xff]   ;;  %v2799_v25 = vld [vmem:[%s3567_s7 + $0x20] sm:$0xff]  }
 0x299   : > { %1305 = vst.msk [vmem:[#allocation5 + $0x15] sm:$0x3] %vm1280_vm6, %v1304_v3  ;;  %v2796_v23 = vld [vmem:[%s3567_s7 + $0x8] sm:$0xff]   ;;  %v2797_v1 = vld [vmem:[%s3567_s7 + $0x10] sm:$0xff]   ;;  %v2802_v3 = vld [vmem:[%s3567_s7 + $0x38] sm:$0xff]  }
 0x29a   : > { %v1316_v34 = vmax.f32 %v1314_v27, %v1315_v28  ;;  %v2800_v26 = vld [vmem:[%s3567_s7 + $0x28] sm:$0xff]   ;;  %v2801_v27 = vld [vmem:[%s3567_s7 + $0x30] sm:$0xff]   ;;  %v2026_v28 = vld [vmem:[%s3569_s9] sm:$0xff] }
 0x29b   : > { %v2563_v33 = vpack.c.bf16 %v2027_v29, %v2026_v28 }
 0x29c   : > { %1317 = vst.msk [vmem:[#allocation5 + $0x19] sm:$0x3] %vm1280_vm6, %v1316_v34  ;;  %v2029_v34 = vld [vmem:[%s3569_s9 + $0x18] sm:$0xff] }
 0x29d   : > { %v2566_v35 = vpack.c.bf16 %v2029_v34, %v2028_v30  ;;  %v2809_v30 = vld [vmem:[%s3567_s7 + $0x70] sm:$0xff]   ;;  %v2810_v34 = vld [vmem:[%s3567_s7 + $0x78] sm:$0xff]  }
 0x2a0   : > { %v1321_v39 = vld [vmem:[#allocation5 + $0x10] sm:$0xff] }
 0x2a1   : > { %v2731_v7 = vpack.i.bf16 %v1321_v39, %v1320_v38  ;;  %v1319_v53 = vld [vmem:[#allocation5 + $0xf] sm:$0xff]  ;;  %v2569_v38 = vpack.c.bf16 %v2031_v37, %v2030_v36 }
 0x2a2   : > { %v1323_v61 = vld [vmem:[#allocation5 + $0x11] sm:$0xff] }
 0x2a3   : > { %2732 = vrot.lane.b32.xlu1 %v2731_v7, %s3578_s29  ;;  %v1325_v45 = vld [vmem:[#allocation5 + $0x13] sm:$0xff] }
 0x2a4   : > { %v2726_v46 = vpack.i.bf16 %v1325_v45, %v1324_v44  ;;  %v1331_v47 = vld [vmem:[#allocation5 + $0x18] sm:$0xff]  ;;  %v2032_v39 = vld [vmem:[%s3569_s9 + $0x30] sm:$0xff]  ;;  %v2035_v44 = vld [vmem:[%s3569_s9 + $0x48] sm:$0xff] }
 0x2a5   : > { %v1329_v48 = vld [vmem:[#allocation5 + $0x15] sm:$0xff]  ;;  %v2736_v50 = vpack.i.bf16 %v1328_v49, %v1331_v47  ;;  %v2575_v45 = vpack.c.bf16 %v2035_v44, %v2034_v43  ;;  %v2038_v49 = vld [vmem:[%s3569_s9 + $0x60] sm:$0xff] }
 0x2a6   : > { %2727 = vrot.lane.b32.xlu0 %v2726_v46, %s3578_s29  ;;  %v1327_v62 = vld [vmem:[#allocation5 + $0x14] sm:$0xff] }
 0x2a7   : > { %1353 = vrot.lane.b32.xlu1 %v1329_v48, %s3578_s29  ;;  %v1330_v12 = vld [vmem:[#allocation5 + $0x17] sm:$0xff] }
 0x2a8   : > { %v1332_v20 = vld [vmem:[#allocation5 + $0x19] sm:$0xff]  ;;  %v2036_v46 = vld [vmem:[%s3569_s9 + $0x50] sm:$0xff] }
 0x2a9   : > { %v1372_v21 = vpack.c.bf16 %v1332_v20, %v1323_v61  ;;  %v2033_v7 = vld [vmem:[%s3569_s9 + $0x38] sm:$0xff]  ;;  %v2040_v37 = vld [vmem:[%s3569_s9 + $0x70] sm:$0xff] }
 0x2aa   : > { %2737 = vrot.lane.b32.xlu0 %v2736_v50, %s3578_s29  ;;  %v2572_v40 = vpack.c.bf16 %v2033_v7, %v2032_v39  ;;  %v2037_v47 = vld [vmem:[%s3569_s9 + $0x58] sm:$0xff]  ;;  %v2039_v50 = vld [vmem:[%s3569_s9 + $0x68] sm:$0xff]  ;;  %s377_s29 = sand.u32 1, %s2865_s18  }
 0x2ab   : > { %v2578_v48 = vpack.c.bf16 %v2037_v47, %v2036_v46  ;;  %v2042_v47 = vld [vmem:[%s3570_s10] sm:$0x1]  ;;  %s378_s15 = scalar_lea.vmem [#allocation7], %s377_s29  ;;  %s2116_s24 = scalar_lea.sflag [#allocation8], %s377_s29 }
 0x2ac   : > { %s2128_s16 = sshll.u32 %s378_s15, 4  ;;  %s3520_s16 = int_to_ptr.vmem [resolvable:$true] %s2128_s16 }
 0x2ad   : > { %s2811_s30 = scalar_lea.vmem %s3520_s16, 16  ;;  %p2818_p0 = scmp.lt.s32.totalorder %s3520_s16, %s2816_s12 }
 0x2ae   : > { %p2812_p11 = scmp.ne.s32.totalorder %s3520_s16, %s2811_s30  ;;  %p2819_p1 = scmp.lt.s32.totalorder %s2817_s13, %s2811_s30 }
 0x2b0   : > { %p2813_p12 = pnand %p2812_p11, %p2980_p5  ;;  %p2820_p2 = por %p2819_p1, %p2818_p0 }
 0x2b2   : > { %p2814_p13 = pneg %p2813_p12 }
 0x2b4   : > { %p2821_p3 = pnand %p2820_p2, %p2814_p13 }
 0x315   : > { %v2733_v51 = vpop.permute.xlu1 %2732 }
 0x316   : > { %v2735_v0 = vunpack.i.h.bf16 %v2733_v51  ;;  %v2734_v52 = vunpack.i.l.bf16 %v2733_v51  ;;  %v2581_v51 = vpack.c.bf16 %v2039_v50, %v2038_v49 }
 0x318   : > { %v2728_v42 = vpop.permute.xlu0 %2727  ;;  %v1362_v57 = vsel %vm397_vm4, %v1319_v53, %v2735_v0  ;;  %v1361_v58 = vsel %vm397_vm4, %v1318_v54, %v2734_v52  ;;  %v2228_v54 = vld [vmem:[%s3566_s6] ss:$0 sm:$0xff] }
 0x319   : > { %v2730_v55 = vunpack.i.h.bf16 %v2728_v42  ;;  %v2729_v56 = vunpack.i.l.bf16 %v2728_v42  ;;  %v1354_v4 = vpop.permute.xlu1 %1353  ;;  %v1368_v31 = vpack.c.bf16 %v1362_v57, %v1361_v58 }
 0x31a   : > { %v1366_v13 = vsel %vm397_vm4, %v1327_v62, %v1354_v4 }
 0x31b   : > { %v1363_v63 = vsel %vm397_vm4, %v1322_v59, %v2729_v56  ;;  %v1364_v2 = vsel %vm397_vm4, %v1323_v61, %v2730_v55 }
 0x31c   : > { %v2738_v60 = vpop.permute.xlu0 %2737  ;;  %v1369_v5 = vpack.c.bf16 %v1364_v2, %v1363_v63 }
 0x31d   : > { %v2740_v9 = vunpack.i.h.bf16 %v2738_v60  ;;  %v2739_v10 = vunpack.i.l.bf16 %v2738_v60 }
 0x31e   : > { %1703 = vmatprep.mubr.bf16.mxu1 %v1369_v5 }
 0x31f   : > { %v1365_v14 = vsel %vm397_vm4, %v1326_v11, %v2740_v9  ;;  %1704 = vmatmul.mubr.bf16.vlgmr.msra.gmra.mrb[28].mxu1 %v1368_v31  ;;  %v1367_v15 = vsel %vm397_vm4, %v1330_v12, %v2739_v10 }
 0x320   : > { %v1370_v16 = vpack.c.bf16 %v1366_v13, %v1365_v14  ;;  %2472 = vmatpush3.bf16.msra.mxu1 %v2790_v6  ;;  %v1371_v17 = vpack.c.bf16 %v1367_v15, %v1362_v57  ;;  %2479 = vmatprep.mubr.msk.bf16.mxu1 %vm2876_vm3, %v2875_v19 }
 0x321   : > { %2473 = vmatprep.subr.bf16.mxu1 %v2875_v19 }
 0x322   : > { %1744 = vmatprep.mubr.bf16.mxu0 %v1371_v17 }
 0x323   : > { %1745 = vmatmul.mubr.bf16.vlgmr.msra.gmra.mrb[12].mxu0 %v1370_v16 }
 0x324   : > { %2474 = vmatpush3.bf16.msra.mxu1 %v2792_v41  ;;  %2499 = vmatprep.mubr.msk.bf16.mxu0 %vm2876_vm3, %v2875_v19 }
 0x325   : > { %2475 = vmatprep.subr.bf16.mxu1 %v2875_v19  ;;  %2484 = vmatpush3.bf16.msra.mxu0 %v2795_v22 }
 0x326   : > { %2485 = vmatprep.subr.bf16.mxu0 %v2875_v19 }
 0x328   : > { %2476 = vmatpush3.bf16.msra.mxu1 %v2793_v8 }
 0x329   : > { %2477 = vmatprep.subr.bf16.mxu1 %v2875_v19  ;;  %2486 = vmatpush3.bf16.msra.mxu0 %v2796_v23  ;;  %v2804_v23 = vld [vmem:[%s3567_s7 + $0x48] sm:$0xff]  }
 0x32a   : > { %2487 = vmatprep.subr.bf16.mxu0 %v2875_v19 }
 0x32c   : > { %2478 = vmatpush3.bf16.msra.mxu1 %v2794_v18 }
 0x32d   : > { %2488 = vmatpush3.bf16.msra.mxu0 %v2797_v1  ;;  %2562 = vmatprep.subr.bf16.mxu1 %v2880_v32  ;;  %v2805_v1 = vld [vmem:[%s3567_s7 + $0x50] sm:$0xff]  }
 0x32e   : > { %2489 = vmatprep.subr.bf16.mxu0 %v2875_v19 }
 0x32f   : > { %2480 = vmatmul.mubr.msk.bf16.vlgmr.msra.gmra.mrb[32].mxu1 %vm397_vm4, %v1372_v21  ;;  %v2803_v21 = vld [vmem:[%s3567_s7 + $0x40] sm:$0xff]  }
 0x330   : > { %2555 = vmatprep.mubr.msk.f32.mxu1 %vm2876_vm3, %v2875_v19  ;;  %2564 = vmatpush3.bf16.msra.mxu1 %v2563_v33 }
 0x331   : > { %2490 = vmatpush3.bf16.msra.mxu0 %v2798_v24  ;;  %2565 = vmatprep.subr.bf16.mxu1 %v2880_v32  ;;  %v2806_v24 = vld [vmem:[%s3567_s7 + $0x58] sm:$0xff]  }
 0x332   : > { %2491 = vmatprep.subr.bf16.mxu0 %v2875_v19 }
 0x334   : > { %2567 = vmatpush3.bf16.msra.mxu1 %v2566_v35 }
 0x335   : > { %2492 = vmatpush3.bf16.msra.mxu0 %v2799_v25  ;;  %2568 = vmatprep.subr.bf16.mxu1 %v2880_v32  ;;  %v2807_v25 = vld [vmem:[%s3567_s7 + $0x60] sm:$0xff]  }
 0x336   : > { %2493 = vmatprep.subr.bf16.mxu0 %v2875_v19 }
 0x338   : > { %2570 = vmatpush3.bf16.msra.mxu1 %v2569_v38  ;;  %v2041_v38 = vld [vmem:[%s3569_s9 + $0x78] sm:$0xff] }
 0x339   : > { %2494 = vmatpush3.bf16.msra.mxu0 %v2800_v26  ;;  %2571 = vmatprep.subr.bf16.mxu1 %v2880_v32  ;;  %v2808_v26 = vld [vmem:[%s3567_s7 + $0x68] sm:$0xff]   ;;  %v2584_v39 = vpack.c.bf16 %v2041_v38, %v2040_v37 }
 0x33a   : > { %2495 = vmatprep.subr.bf16.mxu0 %v2875_v19 }
 0x33c   : > { %2573 = vmatpush3.bf16.msra.mxu1 %v2572_v40 }
 0x33d   : > { %2496 = vmatpush3.bf16.msra.mxu0 %v2801_v27  ;;  %2574 = vmatprep.subr.bf16.mxu1 %v2880_v32 }
 0x33e   : > { %2497 = vmatprep.subr.bf16.mxu0 %v2875_v19 }
 0x340   : > { %2576 = vmatpush3.bf16.msra.mxu1 %v2575_v45 }
 0x341   : > { %2498 = vmatpush3.bf16.msra.mxu0 %v2802_v3  ;;  %2577 = vmatprep.subr.bf16.mxu1 %v2880_v32 }
 0x342   : > { %2503 = vmatprep.subr.bf16.mxu0 %v2875_v19 }
 0x344   : > { %2579 = vmatpush3.bf16.msra.mxu1 %v2578_v48 }
 0x345   : > { %2580 = vmatprep.subr.bf16.mxu1 %v2880_v32 }
 0x348   : > { %2582 = vmatpush3.bf16.msra.mxu1 %v2581_v51 }
 0x349   : > { %2583 = vmatprep.subr.bf16.mxu1 %v2880_v32 }
 0x34c   : > { %2585 = vmatpush3.bf16.msra.mxu1 %v2584_v39 }
 0x3f2   : > { %v2359_v0 = vpop.f32.mrb[28].mxu1 }
 0x3f3   : > { %v2360_v52 = vpop.f32.mrb[29].mxu1 }
 0x3f4   : > { %v2361_v42 = vadd.f32 %v2360_v52, %v2359_v0  ;;  %v2362_v53 = vpop.f32.mrb[30].mxu1 }
 0x3f5   : > { %v2363_v55 = vpop.f32.mrb[31].mxu1 }
 0x3f6   : > { %v2364_v56 = vadd.f32 %v2363_v55, %v2362_v53  ;;  %v2381_v57 = vpop.f32.mrb[12].mxu0  ;;  %v1706_v59 = vadd.f32 %v2361_v42, %v2228_v54 }
 0x3f7   : > { %v2382_v58 = vpop.f32.mrb[13].mxu0 }
 0x3f8   : > { %v2383_v61 = vadd.f32 %v2382_v58, %v2381_v57  ;;  %v2384_v63 = vpop.f32.mrb[14].mxu0  ;;  %v1709_v4 = vadd.f32 %v2364_v56, %v2228_v54 }
 0x3f9   : > { %v2385_v2 = vpop.f32.mrb[15].mxu0 }
 0x3fa   : > { %v2386_v60 = vadd.f32 %v2385_v2, %v2384_v63  ;;  %v1747_v5 = vadd.f32 %v2383_v61, %v1706_v59 }
 0x3fc   : > { %v1750_v6 = vadd.f32 %v2386_v60, %v1709_v4 }
 0x402   : > { %v1787_v31 = vpop.f32.mrb[32].mxu1 }
 0x403   : > { %v1788_v9 = vadd.f32 %v1787_v31, %v1747_v5  ;;  %v2481_v10 = vpop.f32.mrb[33].mxu1 }
 0x404   : > { %v1790_v62 = vpop.f32.mrb[34].mxu1 }
 0x405   : > { %v1794_v11 = vmax.f32 %v1788_v9, 0.0  ;;  %v1791_v12 = vadd.f32 %v1790_v62, %v1750_v6  ;;  %v2482_v13 = vpop.f32.mrb[35].mxu1 }
 0x407   : > { %1796 = vst [vmem:[#allocation6] sm:$0xff] %v1794_v11  ;;  %v1795_v14 = vmax.f32 %v1791_v12, 0.0 }
 0x409   : > { %1797 = vst [vmem:[#allocation6 + $0x8] sm:$0xff] %v1795_v14 }
 0x40e   : > { %v1799_v15 = vld [vmem:[#allocation6 + $0x1] sm:$0x1]  ;;  %v1800_v16 = vld [vmem:[#allocation6 + $0x2] sm:$0x1]  ;;  %v1801_v17 = vld [vmem:[#allocation6 + $0x5] sm:$0x1] }
 0x40f   : > { %v1802_v41 = vld [vmem:[#allocation6 + $0x6] sm:$0x1]  ;;  %v1803_v8 = vmax.f32 %v1799_v15, %v1800_v16 }
 0x410   : > { %v1804_v18 = vmax.f32 %v1801_v17, %v1802_v41  ;;  %v1912_v27 = vld [vmem:[#allocation6 + $0x9] sm:$0x1]  ;;  %v1913_v3 = vld [vmem:[#allocation6 + $0xa] sm:$0x1]  ;;  %v1914_v28 = vld [vmem:[#allocation6 + $0xd] sm:$0x1] }
 0x411   : > { %v1915_v29 = vld [vmem:[#allocation6 + $0xe] sm:$0x1]  ;;  %v1916_v32 = vmax.f32 %v1912_v27, %v1913_v3 }
 0x412   : > { %v1805_v20 = vmax.f32 %v1803_v8, %v1804_v18  ;;  %v1917_v33 = vmax.f32 %v1914_v28, %v1915_v29 }
 0x414   : > { %v1806_v22 = vpack.c.bf16 %v1805_v20, %v1805_v20  ;;  %v1918_v35 = vmax.f32 %v1916_v32, %v1917_v33 }
 0x416   : > { %2500 = vmatmul.mubr.bf16.vlgmr.msra.gmra.mrb[16].mxu0 %v1806_v22  ;;  %v1919_v36 = vpack.c.bf16 %v1918_v35, %v1918_v35 }
 0x417   : > { %2504 = vmatpush3.bf16.msra.mxu0 %v2803_v21  ;;  %2519 = vmatprep.mubr.msk.bf16.mxu0 %vm2876_vm3, %v2875_v19 }
 0x418   : > { %2505 = vmatprep.subr.bf16.mxu0 %v2875_v19 }
 0x41b   : > { %2506 = vmatpush3.bf16.msra.mxu0 %v2804_v23 }
 0x41c   : > { %2507 = vmatprep.subr.bf16.mxu0 %v2875_v19 }
 0x41f   : > { %2508 = vmatpush3.bf16.msra.mxu0 %v2805_v1 }
 0x420   : > { %2509 = vmatprep.subr.bf16.mxu0 %v2875_v19 }
 0x423   : > { %2510 = vmatpush3.bf16.msra.mxu0 %v2806_v24 }
 0x424   : > { %2511 = vmatprep.subr.bf16.mxu0 %v2875_v19 }
 0x427   : > { %2512 = vmatpush3.bf16.msra.mxu0 %v2807_v25 }
 0x428   : > { %2513 = vmatprep.subr.bf16.mxu0 %v2875_v19 }
 0x42b   : > { %2514 = vmatpush3.bf16.msra.mxu0 %v2808_v26 }
 0x42c   : > { %2515 = vmatprep.subr.bf16.mxu0 %v2875_v19 }
 0x42f   : > { %2516 = vmatpush3.bf16.msra.mxu0 %v2809_v30 }
 0x430   : > { %2517 = vmatprep.subr.bf16.mxu0 %v2875_v19  ;;  %v1798_v19 = vld [vmem:[%s3568_s8] sm:$0x1] }
 0x433   : > { %2518 = vmatpush3.bf16.msra.mxu0 %v2810_v34 }
 0x436   : > { %2520 = vmatmul.mubr.bf16.vlgmr.msra.gmra.mrb[16].mxu0 %v1919_v36 }
 0x509   : > { %v2018_v7 = vpop.f32.mrb[16].mxu0 }
 0x50a   : > { %v2586_v40 = vadd.f32 %v2018_v7, %v1798_v19  ;;  %v2521_v43 = vpop.f32.mrb[17].mxu0 }
 0x50b   : > { %v2021_v44 = vpop.f32.mrb[18].mxu0 }
 0x50c   : > { %v2025_v45 = vmax.f32 %v2586_v40, 0.0  ;;  %v2522_v46 = vpop.f32.mrb[19].mxu0 }
 0x50e   : > { %2556 = vmatmul.mubr.f32.vlgmr.msra.gmra.mrb[36].mxu1 %v2025_v45 }
 0x5e1   : > { %v2109_v48 = vpop.f32.mrb[36].mxu1 }
 0x5e2   : > { %v2110_v49 = vadd.f32 %v2109_v48, %v2042_v47  ;;  %v2557_v50 = vpop.f32.mrb[37].mxu1 }
 0x5e4   : > { %2114 = vst.msk [vmem:[%s378_s15] sm:$0x1] %vm2113_vm7, %v2110_v49 }
 0x5e5   : > { %2824 = shalt.err (!%p2821_p3)
}
 0x5e6   : > { %s2825_s29 = scalar_lea.hbm %s3518_s0, 16  ;;  %s2829_s25 = scalar_lea.hbm %s3571_s11, 32 }
 0x5e7   : > { %p2826_p4 = scmp.ne.s32.totalorder %s3518_s0, %s2825_s29  ;;  %p2830_p9 = scmp.lt.u32.totalorder %s3518_s0, %s3571_s11 }
 0x5e8   : > { %p2831_p10 = scmp.lt.u32.totalorder %s2829_s25, %s2825_s29  ;;  %p2833_p12 = scmp.lt.u32.totalorder %s2825_s29, %s3518_s0 }
 0x5e9   : > { %p2827_p7 = pnand %p2826_p4, %p2980_p5 }
 0x5ea   : > { %p2832_p11 = por %p2831_p10, %p2830_p9 }
 0x5eb   : > { %p2828_p8 = pneg %p2827_p7 }
 0x5ec   : > { %p2834_p13 = por %p2833_p12, %p2832_p11 }
 0x5ee   : > { %p2835_p0 = pnand %p2834_p13, %p2828_p8 }
 0x5f0   : > { %2838 = shalt.err (!%p2835_p0)
}
 0x5f1   : > { %2591 = dma.vmem_to_hbm [thread:$0]  (%p2980_p5), %s3520_s16, 16, %s3518_s0, %s2116_s24  }
 0x5f2 PF: > { %p2597_p1 = scmp.ge.s32.totalorder %s2873_s20, 2  ;;  %s2140_s30 = sand.u32 1, %s2861_s17  }
 0x5f3   : > { %s2141_s12 = scalar_lea.sflag [#allocation8], %s2140_s30 }
 0x5f4   : > { %p2594_p2 = pnand %p2597_p1, %p2984_p6 }
 0x5f6   : > { %2856 = dma.done.wait (!%p2594_p2), %s2141_s12, 16  }
 0x5f7   : > { %2858 = vsyncadd (!%p2594_p2), %s2141_s12, 4294967280  ;;  %p21_p3 = scmp.ge.s32.totalorder %s2967_s23, 4   ;;  %s3579_s17 = smov %s2865_s18 }
 0x5f8   : > { %s3580_s18 = smov %s2869_s19  ;;  %s3581_s19 = smov %s2978_s26 }
 0x5f9   : > { %s3582_s20 = smov %s2967_s23  ;;  %23 = sbr.rel (!%p21_p3) target bundleno = 5 (0x5), region = 146 }
 0x600   :  { %2145 = vsyncpa [#allocation8], 1 }
 0x601   :  { %2147 = vsyncpa [#allocation8 + $0x1], 1 }

</bundles_post_ra>
